<compile_context>
chip_gen: v7x
topology: tpu7x:2x2x1
jax: 0.10.0
libtpu: 0.0.40
codegen_flags: <defaults>
</compile_context>

<pallas_src>
import jax
import jax.numpy as jnp
from jax import lax
from jax.experimental import pallas as pl
from jax.experimental.pallas import tpu as pltpu


def _cross_attn_kernel(q_in_ref, k_in_ref, wq_ref, wk_ref, wv_ref,
                       wproj_ref, bproj_ref, o_ref, *, num_heads, head_dim):
    # q_in_ref: (1, TQ, C)  k_in_ref: (1, Nk, C)
    # wq_ref/wk_ref/wv_ref: (C, C)  (wq already has the softmax scale folded in)
    # wproj_ref: (C, C)  bproj_ref: (1, C)
    xq = q_in_ref[0]                      # (TQ, C), input dtype (bf16/f32)
    xk = k_in_ref[0]                      # (Nk, C)
    tq, c = xq.shape
    in_dtype = xq.dtype

    # Projections on the MXU: operands in input dtype, accumulate in f32.
    q = jnp.dot(xq, wq_ref[...], preferred_element_type=jnp.float32)   # (TQ, C)
    k = jnp.dot(xk, wk_ref[...], preferred_element_type=jnp.float32)   # (Nk, C)
    v = jnp.dot(xk, wv_ref[...], preferred_element_type=jnp.float32)   # (Nk, C)

    # MXU operands for the attention matmuls stay in the (narrow) input dtype.
    qc = q.astype(in_dtype)
    kc = k.astype(in_dtype)
    vc = v.astype(in_dtype)

    # Fused per-head attention + head-merge + output projection.
    # y accumulates sum_h (softmax(q_h k_h^T) v_h) @ Wproj[h_rows, :]  in f32.
    y = jnp.zeros((tq, c), dtype=jnp.float32)
    for h in range(num_heads):                      # static trip count
        lo = h * head_dim
        hi = lo + head_dim
        qh = qc[:, lo:hi]                           # (TQ, hd)
        kh = kc[:, lo:hi]                           # (Nk, hd)
        vh = vc[:, lo:hi]                           # (Nk, hd)

        # logits = q_h @ k_h^T, contracted over head_dim -> (TQ, Nk), f32.
        s = lax.dot_general(qh, kh, (((1,), (1,)), ((), ())),
                            preferred_element_type=jnp.float32)
        # max-subtracted softmax in f32.
        s = s - jnp.max(s, axis=-1, keepdims=True)
        p = jnp.exp(s)
        p = p * pl.reciprocal(jnp.sum(p, axis=-1, keepdims=True), approx=True)

        # out_h = p @ v_h -> (TQ, hd); fuse head merge + projection:
        out_h = jnp.dot(p.astype(in_dtype), vh,
                        preferred_element_type=jnp.float32)
        y = y + jnp.dot(out_h.astype(in_dtype), wproj_ref[lo:hi, :],
                        preferred_element_type=jnp.float32)

    o_ref[0] = (y + bproj_ref[...]).astype(o_ref.dtype)


def prepare_cross_attention_params(params, num_heads):
    """One-time host-side weight prep (transpose, split kv, fold scale)."""
    C = params["wq"].shape[0]
    head_dim = C // num_heads
    scale = head_dim ** (-0.5)
    wkv = params["wkv"]                       # (2C, C), PyTorch (out, in) layout
    return {
        "wq_t": params["wq"].T * scale,       # (C, C), scale folded in
        "wk_t": wkv[:C, :].T,                 # (C, C)
        "wv_t": wkv[C:, :].T,                 # (C, C)
        "wproj_t": params["wproj"].T,         # (C, C)
        "bproj": params["bproj"].reshape(1, C),
    }


def cross_attention_pallas(query, key, prepared, num_heads):
    """query: (B, Nq, C), key: (B, Nk, C). Returns (B, Nq, C)."""
    B, Nq, C = query.shape
    _, Nk, _ = key.shape
    head_dim = C // num_heads

    # Query-row tiling: 128-row tiles when Nq allows, else the full Nq block.
    tq = 128 if (Nq % 128 == 0) else Nq
    nq_tiles = Nq // tq

    kernel = lambda *refs: _cross_attn_kernel(
        *refs, num_heads=num_heads, head_dim=head_dim)

    return pl.pallas_call(
        kernel,
        out_shape=jax.ShapeDtypeStruct((B, Nq, C), query.dtype),
        grid_spec=pltpu.PrefetchScalarGridSpec(
            num_scalar_prefetch=0,
            grid=(B, nq_tiles),
            in_specs=[
                pl.BlockSpec((1, tq, C), lambda b, i: (b, i, 0)),   # query tile
                pl.BlockSpec((1, Nk, C), lambda b, i: (b, 0, 0)),   # full key
                pl.BlockSpec((C, C), lambda b, i: (0, 0)),          # wq (scaled)
                pl.BlockSpec((C, C), lambda b, i: (0, 0)),          # wk
                pl.BlockSpec((C, C), lambda b, i: (0, 0)),          # wv
                pl.BlockSpec((C, C), lambda b, i: (0, 0)),          # wproj
                pl.BlockSpec((1, C), lambda b, i: (0, 0)),          # bproj
            ],
            out_specs=pl.BlockSpec((1, tq, C), lambda b, i: (b, i, 0)),
        ),
        compiler_params=pltpu.CompilerParams(
            dimension_semantics=("parallel", "parallel")),
    )(query, key, prepared["wq_t"], prepared["wk_t"], prepared["wv_t"],
      prepared["wproj_t"], prepared["bproj"])


def cross_attention_ref(query, key, params, num_heads):
    """Plain-JAX reference matching the PyTorch forward exactly."""
    B, Nq, C = query.shape
    _, Nk, _ = key.shape
    hd = C // num_heads
    scale = hd ** (-0.5)
    q = query @ params["wq"].T                                   # (B, Nq, C)
    kv = key @ params["wkv"].T                                   # (B, Nk, 2C)
    q = q.reshape(B, Nq, num_heads, hd).transpose(0, 2, 1, 3)    # (B,H,Nq,hd)
    kv = kv.reshape(B, Nk, 2, num_heads, hd).transpose(2, 0, 3, 1, 4)
    k, v = kv[0], kv[1]                                          # (B,H,Nk,hd)
    attn = (q * scale) @ jnp.swapaxes(k, -2, -1)                 # (B,H,Nq,Nk)
    attn = attn - jnp.max(attn, axis=-1, keepdims=True)
    attn = jax.nn.softmax(attn, axis=-1)
    x = (attn @ v).transpose(0, 2, 1, 3).reshape(B, Nq, C)
    return x @ params["wproj"].T + params["bproj"]


if __name__ == "__main__":
    B, Nq, Nk, C, H = 2, 8, 16, 32, 8

    root = jax.random.PRNGKey(0)
    kq, kk, k1, k2, k3, k4 = jax.random.split(root, 6)

    query = jax.random.normal(kq, (B, Nq, C), dtype=jnp.float32)
    key = jax.random.normal(kk, (B, Nk, C), dtype=jnp.float32)

    # Deterministic parameter init (nn.Linear shapes: W is (out, in)).
    params = {
        "wq": jax.random.normal(k1, (C, C), dtype=jnp.float32) * 0.05,
        "wkv": jax.random.normal(k2, (2 * C, C), dtype=jnp.float32) * 0.05,
        "wproj": jax.random.normal(k3, (C, C), dtype=jnp.float32) * 0.05,
        "bproj": jax.random.normal(k4, (C,), dtype=jnp.float32) * 0.05,
    }

    prepared = prepare_cross_attention_params(params, num_heads=H)

    out = cross_attention_pallas(query, key, prepared, num_heads=H)
    out = jax.block_until_ready(out)

    ref = cross_attention_ref(query, key, params, num_heads=H)
    assert out.shape == (B, Nq, C)
    # Tolerance slightly relaxed vs v1: pl.reciprocal(approx=True) introduces a
    # small (<<1e-3 relative) drift in the softmax normalization.
    assert jnp.allclose(out, ref, atol=2e-3, rtol=2e-3), "mismatch vs reference"

    print("KERNEL_OK")
</pallas_src>

<mosaic_0001>
module attributes {stable_mosaic.version = 11 : i64} {
  func.func @_lambda_(%arg0: i32, %arg1: i32, %arg2: memref<1x8x32xf32, #tpu.memory_space<vmem>>, %arg3: memref<1x16x32xf32, #tpu.memory_space<vmem>>, %arg4: memref<32x32xf32, #tpu.memory_space<vmem>>, %arg5: memref<32x32xf32, #tpu.memory_space<vmem>>, %arg6: memref<32x32xf32, #tpu.memory_space<vmem>>, %arg7: memref<32x32xf32, #tpu.memory_space<vmem>>, %arg8: memref<1x32xf32, #tpu.memory_space<vmem>>, %arg9: memref<1x8x32xf32, #tpu.memory_space<vmem>>) attributes {dimension_semantics = [#tpu.dimension_semantics<parallel>, #tpu.dimension_semantics<parallel>], iteration_bounds = array<i64: 2, 1>, scalar_prefetch = 0 : i64, scratch_operands = 0 : i64, tpu.core_type = #tpu.core_type<tc>, window_params = [{transform_indices = @transform_0, window_bounds = array<i64: 1, 8, 32>}, {transform_indices = @transform_1, window_bounds = array<i64: 1, 16, 32>}, {pipeline_mode = #tpu.pipeline_mode<synchronous>, transform_indices = @transform_2, window_bounds = array<i64: 32, 32>}, {pipeline_mode = #tpu.pipeline_mode<synchronous>, transform_indices = @transform_3, window_bounds = array<i64: 32, 32>}, {pipeline_mode = #tpu.pipeline_mode<synchronous>, transform_indices = @transform_4, window_bounds = array<i64: 32, 32>}, {pipeline_mode = #tpu.pipeline_mode<synchronous>, transform_indices = @transform_5, window_bounds = array<i64: 32, 32>}, {pipeline_mode = #tpu.pipeline_mode<synchronous>, transform_indices = @transform_6, window_bounds = array<i64: 1, 32>}, {transform_indices = @transform_7, window_bounds = array<i64: 1, 8, 32>}]} {
    %c0 = arith.constant 0 : index
    %c0_0 = arith.constant 0 : index
    %c0_1 = arith.constant 0 : index
    %0 = vector.load %arg2[%c0, %c0_0, %c0_1] : memref<1x8x32xf32, #tpu.memory_space<vmem>>, vector<1x8x32xf32>
    %1 = vector.shape_cast %0 : vector<1x8x32xf32> to vector<8x32xf32>
    %c0_2 = arith.constant 0 : index
    %c0_3 = arith.constant 0 : index
    %c0_4 = arith.constant 0 : index
    %2 = vector.load %arg3[%c0_2, %c0_3, %c0_4] : memref<1x16x32xf32, #tpu.memory_space<vmem>>, vector<1x16x32xf32>
    %3 = vector.shape_cast %2 : vector<1x16x32xf32> to vector<16x32xf32>
    %c0_5 = arith.constant 0 : index
    %c0_6 = arith.constant 0 : index
    %4 = vector.load %arg4[%c0_5, %c0_6] : memref<32x32xf32, #tpu.memory_space<vmem>>, vector<32x32xf32>
    %cst = arith.constant dense<0.000000e+00> : vector<8x32xf32>
    %5 = tpu.matmul %1, %4, %cst {dimension_numbers = #tpu.dot_dimension_numbers<[1], [0], [0], [1], [0, 0, 1, 1], [], []>} : vector<8x32xf32>, vector<32x32xf32>, vector<8x32xf32> -> vector<8x32xf32>
    %c0_7 = arith.constant 0 : index
    %c0_8 = arith.constant 0 : index
    %6 = vector.load %arg5[%c0_7, %c0_8] : memref<32x32xf32, #tpu.memory_space<vmem>>, vector<32x32xf32>
    %cst_9 = arith.constant dense<0.000000e+00> : vector<16x32xf32>
    %7 = tpu.matmul %3, %6, %cst_9 {dimension_numbers = #tpu.dot_dimension_numbers<[1], [0], [0], [1], [0, 0, 1, 1], [], []>} : vector<16x32xf32>, vector<32x32xf32>, vector<16x32xf32> -> vector<16x32xf32>
    %c0_10 = arith.constant 0 : index
    %c0_11 = arith.constant 0 : index
    %8 = vector.load %arg6[%c0_10, %c0_11] : memref<32x32xf32, #tpu.memory_space<vmem>>, vector<32x32xf32>
    %cst_12 = arith.constant dense<0.000000e+00> : vector<16x32xf32>
    %9 = tpu.matmul %3, %8, %cst_12 {dimension_numbers = #tpu.dot_dimension_numbers<[1], [0], [0], [1], [0, 0, 1, 1], [], []>} : vector<16x32xf32>, vector<32x32xf32>, vector<16x32xf32> -> vector<16x32xf32>
    %cst_13 = arith.constant 0.000000e+00 : f32
    %10 = vector.broadcast %cst_13 : f32 to vector<8x32xf32>
    %11 = vector.extract_strided_slice %5 {offsets = [0, 0], sizes = [8, 4], strides = [1, 1]} : vector<8x32xf32> to vector<8x4xf32>
    %12 = vector.extract_strided_slice %7 {offsets = [0, 0], sizes = [16, 4], strides = [1, 1]} : vector<16x32xf32> to vector<16x4xf32>
    %13 = vector.extract_strided_slice %9 {offsets = [0, 0], sizes = [16, 4], strides = [1, 1]} : vector<16x32xf32> to vector<16x4xf32>
    %cst_14 = arith.constant dense<0.000000e+00> : vector<8x16xf32>
    %14 = tpu.matmul %11, %12, %cst_14 {dimension_numbers = #tpu.dot_dimension_numbers<[1], [1], [0], [0], [0, 0, 1, 0], [], []>} : vector<8x4xf32>, vector<16x4xf32>, vector<8x16xf32> -> vector<8x16xf32>
    %cst_15 = arith.constant dense<0xFF800000> : vector<8xf32>
    %15 = vector.multi_reduction <maximumf>, %14, %cst_15 [1] : vector<8x16xf32> to vector<8xf32>
    %16 = vector.shape_cast %15 : vector<8xf32> to vector<8x1xf32>
    %17 = vector.broadcast %16 : vector<8x1xf32> to vector<8x16xf32>
    %18 = arith.subf %14, %17 : vector<8x16xf32>
    %19 = math.exp %18 : vector<8x16xf32>
    %cst_16 = arith.constant dense<0.000000e+00> : vector<8xf32>
    %20 = vector.multi_reduction <add>, %19, %cst_16 [1] : vector<8x16xf32> to vector<8xf32>
    %21 = vector.shape_cast %20 : vector<8xf32> to vector<8x1xf32>
    %22 = tpu.reciprocal %21 {approx = true} : vector<8x1xf32> -> vector<8x1xf32>
    %23 = vector.broadcast %22 : vector<8x1xf32> to vector<8x16xf32>
    %24 = arith.mulf %19, %23 : vector<8x16xf32>
    %cst_17 = arith.constant dense<0.000000e+00> : vector<8x4xf32>
    %25 = tpu.matmul %24, %13, %cst_17 {dimension_numbers = #tpu.dot_dimension_numbers<[1], [0], [0], [1], [0, 0, 1, 1], [], []>} : vector<8x16xf32>, vector<16x4xf32>, vector<8x4xf32> -> vector<8x4xf32>
    %c0_18 = arith.constant 0 : index
    %c0_19 = arith.constant 0 : index
    %26 = vector.load %arg7[%c0_18, %c0_19] : memref<32x32xf32, #tpu.memory_space<vmem>>, vector<4x32xf32>
    %cst_20 = arith.constant dense<0.000000e+00> : vector<8x32xf32>
    %27 = tpu.matmul %25, %26, %cst_20 {dimension_numbers = #tpu.dot_dimension_numbers<[1], [0], [0], [1], [0, 0, 1, 1], [], []>} : vector<8x4xf32>, vector<4x32xf32>, vector<8x32xf32> -> vector<8x32xf32>
    %28 = arith.addf %10, %27 : vector<8x32xf32>
    %29 = vector.extract_strided_slice %5 {offsets = [0, 4], sizes = [8, 4], strides = [1, 1]} : vector<8x32xf32> to vector<8x4xf32>
    %30 = vector.extract_strided_slice %7 {offsets = [0, 4], sizes = [16, 4], strides = [1, 1]} : vector<16x32xf32> to vector<16x4xf32>
    %31 = vector.extract_strided_slice %9 {offsets = [0, 4], sizes = [16, 4], strides = [1, 1]} : vector<16x32xf32> to vector<16x4xf32>
    %cst_21 = arith.constant dense<0.000000e+00> : vector<8x16xf32>
    %32 = tpu.matmul %29, %30, %cst_21 {dimension_numbers = #tpu.dot_dimension_numbers<[1], [1], [0], [0], [0, 0, 1, 0], [], []>} : vector<8x4xf32>, vector<16x4xf32>, vector<8x16xf32> -> vector<8x16xf32>
    %cst_22 = arith.constant dense<0xFF800000> : vector<8xf32>
    %33 = vector.multi_reduction <maximumf>, %32, %cst_22 [1] : vector<8x16xf32> to vector<8xf32>
    %34 = vector.shape_cast %33 : vector<8xf32> to vector<8x1xf32>
    %35 = vector.broadcast %34 : vector<8x1xf32> to vector<8x16xf32>
    %36 = arith.subf %32, %35 : vector<8x16xf32>
    %37 = math.exp %36 : vector<8x16xf32>
    %cst_23 = arith.constant dense<0.000000e+00> : vector<8xf32>
    %38 = vector.multi_reduction <add>, %37, %cst_23 [1] : vector<8x16xf32> to vector<8xf32>
    %39 = vector.shape_cast %38 : vector<8xf32> to vector<8x1xf32>
    %40 = tpu.reciprocal %39 {approx = true} : vector<8x1xf32> -> vector<8x1xf32>
    %41 = vector.broadcast %40 : vector<8x1xf32> to vector<8x16xf32>
    %42 = arith.mulf %37, %41 : vector<8x16xf32>
    %cst_24 = arith.constant dense<0.000000e+00> : vector<8x4xf32>
    %43 = tpu.matmul %42, %31, %cst_24 {dimension_numbers = #tpu.dot_dimension_numbers<[1], [0], [0], [1], [0, 0, 1, 1], [], []>} : vector<8x16xf32>, vector<16x4xf32>, vector<8x4xf32> -> vector<8x4xf32>
    %c4 = arith.constant 4 : index
    %c0_25 = arith.constant 0 : index
    %44 = vector.load %arg7[%c4, %c0_25] : memref<32x32xf32, #tpu.memory_space<vmem>>, vector<4x32xf32>
    %cst_26 = arith.constant dense<0.000000e+00> : vector<8x32xf32>
    %45 = tpu.matmul %43, %44, %cst_26 {dimension_numbers = #tpu.dot_dimension_numbers<[1], [0], [0], [1], [0, 0, 1, 1], [], []>} : vector<8x4xf32>, vector<4x32xf32>, vector<8x32xf32> -> vector<8x32xf32>
    %46 = arith.addf %28, %45 : vector<8x32xf32>
    %47 = vector.extract_strided_slice %5 {offsets = [0, 8], sizes = [8, 4], strides = [1, 1]} : vector<8x32xf32> to vector<8x4xf32>
    %48 = vector.extract_strided_slice %7 {offsets = [0, 8], sizes = [16, 4], strides = [1, 1]} : vector<16x32xf32> to vector<16x4xf32>
    %49 = vector.extract_strided_slice %9 {offsets = [0, 8], sizes = [16, 4], strides = [1, 1]} : vector<16x32xf32> to vector<16x4xf32>
    %cst_27 = arith.constant dense<0.000000e+00> : vector<8x16xf32>
    %50 = tpu.matmul %47, %48, %cst_27 {dimension_numbers = #tpu.dot_dimension_numbers<[1], [1], [0], [0], [0, 0, 1, 0], [], []>} : vector<8x4xf32>, vector<16x4xf32>, vector<8x16xf32> -> vector<8x16xf32>
    %cst_28 = arith.constant dense<0xFF800000> : vector<8xf32>
    %51 = vector.multi_reduction <maximumf>, %50, %cst_28 [1] : vector<8x16xf32> to vector<8xf32>
    %52 = vector.shape_cast %51 : vector<8xf32> to vector<8x1xf32>
    %53 = vector.broadcast %52 : vector<8x1xf32> to vector<8x16xf32>
    %54 = arith.subf %50, %53 : vector<8x16xf32>
    %55 = math.exp %54 : vector<8x16xf32>
    %cst_29 = arith.constant dense<0.000000e+00> : vector<8xf32>
    %56 = vector.multi_reduction <add>, %55, %cst_29 [1] : vector<8x16xf32> to vector<8xf32>
    %57 = vector.shape_cast %56 : vector<8xf32> to vector<8x1xf32>
    %58 = tpu.reciprocal %57 {approx = true} : vector<8x1xf32> -> vector<8x1xf32>
    %59 = vector.broadcast %58 : vector<8x1xf32> to vector<8x16xf32>
    %60 = arith.mulf %55, %59 : vector<8x16xf32>
    %cst_30 = arith.constant dense<0.000000e+00> : vector<8x4xf32>
    %61 = tpu.matmul %60, %49, %cst_30 {dimension_numbers = #tpu.dot_dimension_numbers<[1], [0], [0], [1], [0, 0, 1, 1], [], []>} : vector<8x16xf32>, vector<16x4xf32>, vector<8x4xf32> -> vector<8x4xf32>
    %c8 = arith.constant 8 : index
    %c0_31 = arith.constant 0 : index
    %62 = vector.load %arg7[%c8, %c0_31] : memref<32x32xf32, #tpu.memory_space<vmem>>, vector<4x32xf32>
    %cst_32 = arith.constant dense<0.000000e+00> : vector<8x32xf32>
    %63 = tpu.matmul %61, %62, %cst_32 {dimension_numbers = #tpu.dot_dimension_numbers<[1], [0], [0], [1], [0, 0, 1, 1], [], []>} : vector<8x4xf32>, vector<4x32xf32>, vector<8x32xf32> -> vector<8x32xf32>
    %64 = arith.addf %46, %63 : vector<8x32xf32>
    %65 = vector.extract_strided_slice %5 {offsets = [0, 12], sizes = [8, 4], strides = [1, 1]} : vector<8x32xf32> to vector<8x4xf32>
    %66 = vector.extract_strided_slice %7 {offsets = [0, 12], sizes = [16, 4], strides = [1, 1]} : vector<16x32xf32> to vector<16x4xf32>
    %67 = vector.extract_strided_slice %9 {offsets = [0, 12], sizes = [16, 4], strides = [1, 1]} : vector<16x32xf32> to vector<16x4xf32>
    %cst_33 = arith.constant dense<0.000000e+00> : vector<8x16xf32>
    %68 = tpu.matmul %65, %66, %cst_33 {dimension_numbers = #tpu.dot_dimension_numbers<[1], [1], [0], [0], [0, 0, 1, 0], [], []>} : vector<8x4xf32>, vector<16x4xf32>, vector<8x16xf32> -> vector<8x16xf32>
    %cst_34 = arith.constant dense<0xFF800000> : vector<8xf32>
    %69 = vector.multi_reduction <maximumf>, %68, %cst_34 [1] : vector<8x16xf32> to vector<8xf32>
    %70 = vector.shape_cast %69 : vector<8xf32> to vector<8x1xf32>
    %71 = vector.broadcast %70 : vector<8x1xf32> to vector<8x16xf32>
    %72 = arith.subf %68, %71 : vector<8x16xf32>
    %73 = math.exp %72 : vector<8x16xf32>
    %cst_35 = arith.constant dense<0.000000e+00> : vector<8xf32>
    %74 = vector.multi_reduction <add>, %73, %cst_35 [1] : vector<8x16xf32> to vector<8xf32>
    %75 = vector.shape_cast %74 : vector<8xf32> to vector<8x1xf32>
    %76 = tpu.reciprocal %75 {approx = true} : vector<8x1xf32> -> vector<8x1xf32>
    %77 = vector.broadcast %76 : vector<8x1xf32> to vector<8x16xf32>
    %78 = arith.mulf %73, %77 : vector<8x16xf32>
    %cst_36 = arith.constant dense<0.000000e+00> : vector<8x4xf32>
    %79 = tpu.matmul %78, %67, %cst_36 {dimension_numbers = #tpu.dot_dimension_numbers<[1], [0], [0], [1], [0, 0, 1, 1], [], []>} : vector<8x16xf32>, vector<16x4xf32>, vector<8x4xf32> -> vector<8x4xf32>
    %c12 = arith.constant 12 : index
    %c0_37 = arith.constant 0 : index
    %80 = vector.load %arg7[%c12, %c0_37] : memref<32x32xf32, #tpu.memory_space<vmem>>, vector<4x32xf32>
    %cst_38 = arith.constant dense<0.000000e+00> : vector<8x32xf32>
    %81 = tpu.matmul %79, %80, %cst_38 {dimension_numbers = #tpu.dot_dimension_numbers<[1], [0], [0], [1], [0, 0, 1, 1], [], []>} : vector<8x4xf32>, vector<4x32xf32>, vector<8x32xf32> -> vector<8x32xf32>
    %82 = arith.addf %64, %81 : vector<8x32xf32>
    %83 = vector.extract_strided_slice %5 {offsets = [0, 16], sizes = [8, 4], strides = [1, 1]} : vector<8x32xf32> to vector<8x4xf32>
    %84 = vector.extract_strided_slice %7 {offsets = [0, 16], sizes = [16, 4], strides = [1, 1]} : vector<16x32xf32> to vector<16x4xf32>
    %85 = vector.extract_strided_slice %9 {offsets = [0, 16], sizes = [16, 4], strides = [1, 1]} : vector<16x32xf32> to vector<16x4xf32>
    %cst_39 = arith.constant dense<0.000000e+00> : vector<8x16xf32>
    %86 = tpu.matmul %83, %84, %cst_39 {dimension_numbers = #tpu.dot_dimension_numbers<[1], [1], [0], [0], [0, 0, 1, 0], [], []>} : vector<8x4xf32>, vector<16x4xf32>, vector<8x16xf32> -> vector<8x16xf32>
    %cst_40 = arith.constant dense<0xFF800000> : vector<8xf32>
    %87 = vector.multi_reduction <maximumf>, %86, %cst_40 [1] : vector<8x16xf32> to vector<8xf32>
    %88 = vector.shape_cast %87 : vector<8xf32> to vector<8x1xf32>
    %89 = vector.broadcast %88 : vector<8x1xf32> to vector<8x16xf32>
    %90 = arith.subf %86, %89 : vector<8x16xf32>
    %91 = math.exp %90 : vector<8x16xf32>
    %cst_41 = arith.constant dense<0.000000e+00> : vector<8xf32>
    %92 = vector.multi_reduction <add>, %91, %cst_41 [1] : vector<8x16xf32> to vector<8xf32>
    %93 = vector.shape_cast %92 : vector<8xf32> to vector<8x1xf32>
    %94 = tpu.reciprocal %93 {approx = true} : vector<8x1xf32> -> vector<8x1xf32>
    %95 = vector.broadcast %94 : vector<8x1xf32> to vector<8x16xf32>
    %96 = arith.mulf %91, %95 : vector<8x16xf32>
    %cst_42 = arith.constant dense<0.000000e+00> : vector<8x4xf32>
    %97 = tpu.matmul %96, %85, %cst_42 {dimension_numbers = #tpu.dot_dimension_numbers<[1], [0], [0], [1], [0, 0, 1, 1], [], []>} : vector<8x16xf32>, vector<16x4xf32>, vector<8x4xf32> -> vector<8x4xf32>
    %c16 = arith.constant 16 : index
    %c0_43 = arith.constant 0 : index
    %98 = vector.load %arg7[%c16, %c0_43] : memref<32x32xf32, #tpu.memory_space<vmem>>, vector<4x32xf32>
    %cst_44 = arith.constant dense<0.000000e+00> : vector<8x32xf32>
    %99 = tpu.matmul %97, %98, %cst_44 {dimension_numbers = #tpu.dot_dimension_numbers<[1], [0], [0], [1], [0, 0, 1, 1], [], []>} : vector<8x4xf32>, vector<4x32xf32>, vector<8x32xf32> -> vector<8x32xf32>
    %100 = arith.addf %82, %99 : vector<8x32xf32>
    %101 = vector.extract_strided_slice %5 {offsets = [0, 20], sizes = [8, 4], strides = [1, 1]} : vector<8x32xf32> to vector<8x4xf32>
    %102 = vector.extract_strided_slice %7 {offsets = [0, 20], sizes = [16, 4], strides = [1, 1]} : vector<16x32xf32> to vector<16x4xf32>
    %103 = vector.extract_strided_slice %9 {offsets = [0, 20], sizes = [16, 4], strides = [1, 1]} : vector<16x32xf32> to vector<16x4xf32>
    %cst_45 = arith.constant dense<0.000000e+00> : vector<8x16xf32>
    %104 = tpu.matmul %101, %102, %cst_45 {dimension_numbers = #tpu.dot_dimension_numbers<[1], [1], [0], [0], [0, 0, 1, 0], [], []>} : vector<8x4xf32>, vector<16x4xf32>, vector<8x16xf32> -> vector<8x16xf32>
    %cst_46 = arith.constant dense<0xFF800000> : vector<8xf32>
    %105 = vector.multi_reduction <maximumf>, %104, %cst_46 [1] : vector<8x16xf32> to vector<8xf32>
    %106 = vector.shape_cast %105 : vector<8xf32> to vector<8x1xf32>
    %107 = vector.broadcast %106 : vector<8x1xf32> to vector<8x16xf32>
    %108 = arith.subf %104, %107 : vector<8x16xf32>
    %109 = math.exp %108 : vector<8x16xf32>
    %cst_47 = arith.constant dense<0.000000e+00> : vector<8xf32>
    %110 = vector.multi_reduction <add>, %109, %cst_47 [1] : vector<8x16xf32> to vector<8xf32>
    %111 = vector.shape_cast %110 : vector<8xf32> to vector<8x1xf32>
    %112 = tpu.reciprocal %111 {approx = true} : vector<8x1xf32> -> vector<8x1xf32>
    %113 = vector.broadcast %112 : vector<8x1xf32> to vector<8x16xf32>
    %114 = arith.mulf %109, %113 : vector<8x16xf32>
    %cst_48 = arith.constant dense<0.000000e+00> : vector<8x4xf32>
    %115 = tpu.matmul %114, %103, %cst_48 {dimension_numbers = #tpu.dot_dimension_numbers<[1], [0], [0], [1], [0, 0, 1, 1], [], []>} : vector<8x16xf32>, vector<16x4xf32>, vector<8x4xf32> -> vector<8x4xf32>
    %c20 = arith.constant 20 : index
    %c0_49 = arith.constant 0 : index
    %116 = vector.load %arg7[%c20, %c0_49] : memref<32x32xf32, #tpu.memory_space<vmem>>, vector<4x32xf32>
    %cst_50 = arith.constant dense<0.000000e+00> : vector<8x32xf32>
    %117 = tpu.matmul %115, %116, %cst_50 {dimension_numbers = #tpu.dot_dimension_numbers<[1], [0], [0], [1], [0, 0, 1, 1], [], []>} : vector<8x4xf32>, vector<4x32xf32>, vector<8x32xf32> -> vector<8x32xf32>
    %118 = arith.addf %100, %117 : vector<8x32xf32>
    %119 = vector.extract_strided_slice %5 {offsets = [0, 24], sizes = [8, 4], strides = [1, 1]} : vector<8x32xf32> to vector<8x4xf32>
    %120 = vector.extract_strided_slice %7 {offsets = [0, 24], sizes = [16, 4], strides = [1, 1]} : vector<16x32xf32> to vector<16x4xf32>
    %121 = vector.extract_strided_slice %9 {offsets = [0, 24], sizes = [16, 4], strides = [1, 1]} : vector<16x32xf32> to vector<16x4xf32>
    %cst_51 = arith.constant dense<0.000000e+00> : vector<8x16xf32>
    %122 = tpu.matmul %119, %120, %cst_51 {dimension_numbers = #tpu.dot_dimension_numbers<[1], [1], [0], [0], [0, 0, 1, 0], [], []>} : vector<8x4xf32>, vector<16x4xf32>, vector<8x16xf32> -> vector<8x16xf32>
    %cst_52 = arith.constant dense<0xFF800000> : vector<8xf32>
    %123 = vector.multi_reduction <maximumf>, %122, %cst_52 [1] : vector<8x16xf32> to vector<8xf32>
    %124 = vector.shape_cast %123 : vector<8xf32> to vector<8x1xf32>
    %125 = vector.broadcast %124 : vector<8x1xf32> to vector<8x16xf32>
    %126 = arith.subf %122, %125 : vector<8x16xf32>
    %127 = math.exp %126 : vector<8x16xf32>
    %cst_53 = arith.constant dense<0.000000e+00> : vector<8xf32>
    %128 = vector.multi_reduction <add>, %127, %cst_53 [1] : vector<8x16xf32> to vector<8xf32>
    %129 = vector.shape_cast %128 : vector<8xf32> to vector<8x1xf32>
    %130 = tpu.reciprocal %129 {approx = true} : vector<8x1xf32> -> vector<8x1xf32>
    %131 = vector.broadcast %130 : vector<8x1xf32> to vector<8x16xf32>
    %132 = arith.mulf %127, %131 : vector<8x16xf32>
    %cst_54 = arith.constant dense<0.000000e+00> : vector<8x4xf32>
    %133 = tpu.matmul %132, %121, %cst_54 {dimension_numbers = #tpu.dot_dimension_numbers<[1], [0], [0], [1], [0, 0, 1, 1], [], []>} : vector<8x16xf32>, vector<16x4xf32>, vector<8x4xf32> -> vector<8x4xf32>
    %c24 = arith.constant 24 : index
    %c0_55 = arith.constant 0 : index
    %134 = vector.load %arg7[%c24, %c0_55] : memref<32x32xf32, #tpu.memory_space<vmem>>, vector<4x32xf32>
    %cst_56 = arith.constant dense<0.000000e+00> : vector<8x32xf32>
    %135 = tpu.matmul %133, %134, %cst_56 {dimension_numbers = #tpu.dot_dimension_numbers<[1], [0], [0], [1], [0, 0, 1, 1], [], []>} : vector<8x4xf32>, vector<4x32xf32>, vector<8x32xf32> -> vector<8x32xf32>
    %136 = arith.addf %118, %135 : vector<8x32xf32>
    %137 = vector.extract_strided_slice %5 {offsets = [0, 28], sizes = [8, 4], strides = [1, 1]} : vector<8x32xf32> to vector<8x4xf32>
    %138 = vector.extract_strided_slice %7 {offsets = [0, 28], sizes = [16, 4], strides = [1, 1]} : vector<16x32xf32> to vector<16x4xf32>
    %139 = vector.extract_strided_slice %9 {offsets = [0, 28], sizes = [16, 4], strides = [1, 1]} : vector<16x32xf32> to vector<16x4xf32>
    %cst_57 = arith.constant dense<0.000000e+00> : vector<8x16xf32>
    %140 = tpu.matmul %137, %138, %cst_57 {dimension_numbers = #tpu.dot_dimension_numbers<[1], [1], [0], [0], [0, 0, 1, 0], [], []>} : vector<8x4xf32>, vector<16x4xf32>, vector<8x16xf32> -> vector<8x16xf32>
    %cst_58 = arith.constant dense<0xFF800000> : vector<8xf32>
    %141 = vector.multi_reduction <maximumf>, %140, %cst_58 [1] : vector<8x16xf32> to vector<8xf32>
    %142 = vector.shape_cast %141 : vector<8xf32> to vector<8x1xf32>
    %143 = vector.broadcast %142 : vector<8x1xf32> to vector<8x16xf32>
    %144 = arith.subf %140, %143 : vector<8x16xf32>
    %145 = math.exp %144 : vector<8x16xf32>
    %cst_59 = arith.constant dense<0.000000e+00> : vector<8xf32>
    %146 = vector.multi_reduction <add>, %145, %cst_59 [1] : vector<8x16xf32> to vector<8xf32>
    %147 = vector.shape_cast %146 : vector<8xf32> to vector<8x1xf32>
    %148 = tpu.reciprocal %147 {approx = true} : vector<8x1xf32> -> vector<8x1xf32>
    %149 = vector.broadcast %148 : vector<8x1xf32> to vector<8x16xf32>
    %150 = arith.mulf %145, %149 : vector<8x16xf32>
    %cst_60 = arith.constant dense<0.000000e+00> : vector<8x4xf32>
    %151 = tpu.matmul %150, %139, %cst_60 {dimension_numbers = #tpu.dot_dimension_numbers<[1], [0], [0], [1], [0, 0, 1, 1], [], []>} : vector<8x16xf32>, vector<16x4xf32>, vector<8x4xf32> -> vector<8x4xf32>
    %c28 = arith.constant 28 : index
    %c0_61 = arith.constant 0 : index
    %152 = vector.load %arg7[%c28, %c0_61] : memref<32x32xf32, #tpu.memory_space<vmem>>, vector<4x32xf32>
    %cst_62 = arith.constant dense<0.000000e+00> : vector<8x32xf32>
    %153 = tpu.matmul %151, %152, %cst_62 {dimension_numbers = #tpu.dot_dimension_numbers<[1], [0], [0], [1], [0, 0, 1, 1], [], []>} : vector<8x4xf32>, vector<4x32xf32>, vector<8x32xf32> -> vector<8x32xf32>
    %154 = arith.addf %136, %153 : vector<8x32xf32>
    %c0_63 = arith.constant 0 : index
    %c0_64 = arith.constant 0 : index
    %155 = vector.load %arg8[%c0_63, %c0_64] : memref<1x32xf32, #tpu.memory_space<vmem>>, vector<1x32xf32>
    %156 = vector.broadcast %155 : vector<1x32xf32> to vector<8x32xf32>
    %157 = arith.addf %154, %156 : vector<8x32xf32>
    %c0_65 = arith.constant 0 : index
    %c0_66 = arith.constant 0 : index
    %c0_67 = arith.constant 0 : index
    %158 = vector.load %arg9[%c0_65, %c0_66, %c0_67] : memref<1x8x32xf32, #tpu.memory_space<vmem>>, vector<1x8x32xf32>
    %159 = vector.shape_cast %158 : vector<1x8x32xf32> to vector<8x32xf32>
    %160 = vector.shape_cast %157 : vector<8x32xf32> to vector<1x8x32xf32>
    tpu.vector_store %arg9[%c0_65, %c0_66, %c0_67], %160 {strides = array<i32>} : memref<1x8x32xf32, #tpu.memory_space<vmem>>, vector<1x8x32xf32>,
    return
  }
  func.func @transform_0(%arg0: i32, %arg1: i32) -> (i32, i32, i32) {
    %c0_i32 = arith.constant 0 : i32
    %c0_i32_0 = arith.constant 0 : i32
    return %arg0, %arg1, %c0_i32 : i32, i32, i32
  }
  func.func @transform_1(%arg0: i32, %arg1: i32) -> (i32, i32, i32) {
    %c0_i32 = arith.constant 0 : i32
    %c0_i32_0 = arith.constant 0 : i32
    %c0_i32_1 = arith.constant 0 : i32
    return %arg0, %c0_i32, %c0_i32_0 : i32, i32, i32
  }
  func.func @transform_2(%arg0: i32, %arg1: i32) -> (i32, i32) {
    %c0_i32 = arith.constant 0 : i32
    %c0_i32_0 = arith.constant 0 : i32
    %c0_i32_1 = arith.constant 0 : i32
    return %c0_i32, %c0_i32_0 : i32, i32
  }
  func.func @transform_3(%arg0: i32, %arg1: i32) -> (i32, i32) {
    %c0_i32 = arith.constant 0 : i32
    %c0_i32_0 = arith.constant 0 : i32
    %c0_i32_1 = arith.constant 0 : i32
    return %c0_i32, %c0_i32_0 : i32, i32
  }
  func.func @transform_4(%arg0: i32, %arg1: i32) -> (i32, i32) {
    %c0_i32 = arith.constant 0 : i32
    %c0_i32_0 = arith.constant 0 : i32
    %c0_i32_1 = arith.constant 0 : i32
    return %c0_i32, %c0_i32_0 : i32, i32
  }
  func.func @transform_5(%arg0: i32, %arg1: i32) -> (i32, i32) {
    %c0_i32 = arith.constant 0 : i32
    %c0_i32_0 = arith.constant 0 : i32
    %c0_i32_1 = arith.constant 0 : i32
    return %c0_i32, %c0_i32_0 : i32, i32
  }
  func.func @transform_6(%arg0: i32, %arg1: i32) -> (i32, i32) {
    %c0_i32 = arith.constant 0 : i32
    %c0_i32_0 = arith.constant 0 : i32
    %c0_i32_1 = arith.constant 0 : i32
    return %c0_i32, %c0_i32_0 : i32, i32
  }
  func.func @transform_7(%arg0: i32, %arg1: i32) -> (i32, i32, i32) {
    %c0_i32 = arith.constant 0 : i32
    %c0_i32_0 = arith.constant 0 : i32
    return %arg0, %arg1, %c0_i32 : i32, i32, i32
  }
}

</mosaic_0001>

<bundles_post_ra>
// kernel: tpu_custom_call.1
= control target key start
LH: loop header
LB: loop body
LE: loop exit
PB: predicated region body
PF: predicated region fallthrough
CT: control target
= control target key end

     0   :  { %s4366_s0 = inlined_call_operand.hbm [shape: f32[2,8,32], index: 0, kind: input, shape index: {}]   ;;  %s4367_s1 = inlined_call_operand.hbm [shape: f32[2,16,32], index: 1, kind: input, shape index: {}]   ;;  %s4368_s2 = inlined_call_operand.hbm [shape: f32[32,32], index: 2, kind: input, shape index: {}]   ;;  %s4369_s3 = inlined_call_operand.hbm [shape: f32[32,32], index: 3, kind: input, shape index: {}]   ;;  %s4370_s4 = inlined_call_operand.hbm [shape: f32[32,32], index: 4, kind: input, shape index: {}]   ;;  %s4371_s5 = inlined_call_operand.hbm [shape: f32[32,32], index: 5, kind: input, shape index: {}]   ;;  %s4372_s6 = inlined_call_operand.vmem [shape: f32[1,32], index: 6, kind: input, shape index: {}]   ;;  %s4373_s7 = inlined_call_operand.hbm [shape: f32[2,8,32], index: 7, kind: output, shape index: {}]  }
   0x1   :  { %4380 = sst [smem:[#allocation20_spill]] %s4366_s0 }
   0x2   :  { %4381 = sst [smem:[#allocation21_spill]] %s4368_s2 }
   0x3   :  { %4382 = sst [smem:[#allocation22_spill]] %s4369_s3 }
   0x4   :  { %4383 = sst [smem:[#allocation23_spill]] %s4370_s4 }
   0x5   :  { %4384 = sst [smem:[#allocation24_spill]] %s4373_s7 }
   0x6   :  { %12 = vsyncpa [#allocation3], 0 }
   0x7   :  { %14 = vsyncpa [#allocation3 + $0x1], 0 }
   0x8   :  { %15 = vsyncpa [#allocation6], 0 }
   0x9   :  { %17 = vsyncpa [#allocation6 + $0x1], 0 }
   0xa   :  { %18 = vsyncpa [#allocation9], 0 }
   0xb   :  { %19 = vsyncpa [#allocation12], 0 }
   0xc   :  { %20 = vsyncpa [#allocation4], 0 }
   0xd   :  { %22 = vsyncpa [#allocation4 + $0x1], 0  ;;  %s3790_s24 = smov 0   ;;  %s3792_s25 = smov 0  }
   0xe   :  { %s3794_s26 = smov 0   ;;  %s3796_s27 = smov 0  }
   0xf   :  { %s3798_s28 = smov 0   ;;  %s3800_s29 = smov 0  }
  0x10 LB: > { %s3821_s30 = sadd.s32 4294967295, %s3729_s29   ;;  %p2815_p0 = scmp.ge.s32.totalorder %s3729_s29, 1  ;;  %s3729_s29 = sphi %s3800_s29, %s28_s29   ;;  %s3725_s28 = sphi %s3798_s28, %s4418_s28   ;;  %s3721_s27 = sphi %s3796_s27, %s4417_s27   ;;  %s3717_s26 = sphi %s3794_s26, %s4416_s26   ;;  %s3713_s25 = sphi %s3792_s25, %s4415_s25   ;;  %s3709_s24 = sphi %s3790_s24, %s4414_s24  }
  0x11   : > { %p4375_p1 = scmp.eq.s32.totalorder %s3821_s30, 0  ;;  %p232_p2 = scmp.lt.s32.totalorder %s3729_s29, 3 }
  0x12   : > { %s3731_s9 = smov [#allocation7]   ;;  %s3732_s12 = smov [#allocation8]  }
  0x13   : > { %p3826_p3 = pnand %p2815_p0, %p232_p2  ;;  %s244_s10 = sshll.u32 %s3731_s9, 4  ;;  %s3830_s10 = int_to_ptr.vmem [resolvable:$true] %s244_s10 }
  0x14   : > { %s257_s13 = sshll.u32 %s3732_s12, 4  ;;  %s3733_s14 = smov [#allocation10]   ;;  %s3841_s13 = int_to_ptr.vmem [resolvable:$true] %s257_s13 }
  0x15   : > { %s4385_s8 = scalar_select %p3826_p3, 1, 0 }
  0x16   : > { %p3259_p4 = pneg %p3826_p3  ;;  %s3843_s15 = sshll.u32 %s3733_s14, 4  ;;  %s271_s15 = int_to_ptr.vmem [resolvable:$true] %s3843_s15 }
  0x17   : > { %s4387_s2 = sld [smem:[#allocation21_spill]] }
  0x18   : > { %p3837_p6 = pnand %p3259_p4, %p4375_p1 }
  0x1a   : > { %p3853_p8 = pneg %p3837_p6 }
  0x1d   : > { %s3459_s18 = scalar_lea.hbm %s4387_s2, 512 }
  0x1e   : > { %p3460_p7 = scmp.ne.s32.totalorder %s4387_s2, %s3459_s18  ;;  %p3466_p11 = scmp.lt.u32.totalorder %s3459_s18, %s4387_s2 }
  0x20   : > { %p3462_p9 = pnand %p3853_p8, %p3460_p7 }
  0x22   : > { %p3463_p10 = pneg %p3462_p9 }
  0x24   : > { %p3468_p12 = pnand %p3466_p11, %p3463_p10 }
  0x26   : > { %3471 = shalt.err (!%p3468_p12)
}
  0x27   : > { %s3472_s9 = scalar_lea.vmem %s3830_s10, 512  ;;  %p3480_p4 = scmp.lt.s32.totalorder %s3830_s10, %s3830_s10 }
  0x28   : > { %p3473_p13 = scmp.ne.s32.totalorder %s3830_s10, %s3472_s9  ;;  %p3481_p5 = scmp.lt.s32.totalorder %s3472_s9, %s3472_s9 }
  0x2a   : > { %p3475_p0 = pnand %p3473_p13, %p3853_p8  ;;  %p3482_p7 = por %p3481_p5, %p3480_p4 }
  0x2c   : > { %p3476_p2 = pneg %p3475_p0 }
  0x2e   : > { %p3483_p9 = pnand %p3482_p7, %p3476_p2 }
  0x30   : > { %3486 = shalt.err (!%p3483_p9)
}
  0x31   : > { %s4377_s12 = smov 128   ;;  %s4378_s14 = smov 8  }
  0x32   : > { %3262 = dma.hbm_to_vmem [thread:$0]  (!%p3837_p6), %s4387_s2, 512, %s3830_s10, [#allocation6], %s4377_s12, %s4377_s12, %s4378_s14  }
  0x33   : > { %s4389_s3 = sld [smem:[#allocation22_spill]] }
  0x39   : > { %s3487_s20 = scalar_lea.hbm %s4389_s3, 512 }
  0x3a   : > { %p3488_p5 = scmp.ne.s32.totalorder %s4389_s3, %s3487_s20  ;;  %p3494_p12 = scmp.lt.u32.totalorder %s3487_s20, %s4389_s3 }
  0x3c   : > { %p3490_p10 = pnand %p3488_p5, %p3853_p8 }
  0x3e   : > { %p3491_p11 = pneg %p3490_p10 }
  0x40   : > { %p3496_p13 = pnand %p3494_p12, %p3491_p11 }
  0x42   : > { %3499 = shalt.err (!%p3496_p13)
}
  0x43   : > { %s3500_s10 = scalar_lea.vmem %s3841_s13, 512  ;;  %p3508_p7 = scmp.lt.s32.totalorder %s3841_s13, %s3841_s13 }
  0x44   : > { %p3501_p0 = scmp.ne.s32.totalorder %s3841_s13, %s3500_s10  ;;  %p3509_p9 = scmp.lt.s32.totalorder %s3500_s10, %s3500_s10 }
  0x46   : > { %p3503_p2 = pnand %p3501_p0, %p3853_p8  ;;  %p3510_p5 = por %p3509_p9, %p3508_p7 }
  0x48   : > { %p3504_p4 = pneg %p3503_p2 }
  0x4a   : > { %p3511_p10 = pnand %p3510_p5, %p3504_p4 }
  0x4c   : > { %3514 = shalt.err (!%p3511_p10)
}
  0x4d   : > { %3265 = dma.hbm_to_vmem [thread:$0]  (!%p3837_p6), %s4389_s3, 512, %s3841_s13, [#allocation9], %s4377_s12, %s4377_s12, %s4378_s14  }
  0x4e   : > { %s4390_s4 = sld [smem:[#allocation23_spill]] }
  0x54   : > { %s3515_s19 = scalar_lea.hbm %s4390_s4, 512 }
  0x55   : > { %p3516_p11 = scmp.ne.s32.totalorder %s4390_s4, %s3515_s19  ;;  %p3522_p0 = scmp.lt.u32.totalorder %s3515_s19, %s4390_s4 }
  0x57   : > { %p3518_p12 = pnand %p3516_p11, %p3853_p8 }
  0x59   : > { %p3519_p13 = pneg %p3518_p12 }
  0x5b   : > { %p3524_p2 = pnand %p3522_p0, %p3519_p13 }
  0x5d   : > { %3527 = shalt.err (!%p3524_p2)
}
  0x5e   : > { %s3528_s10 = scalar_lea.vmem %s271_s15, 512  ;;  %p3536_p5 = scmp.lt.s32.totalorder %s271_s15, %s271_s15 }
  0x5f   : > { %p3529_p4 = scmp.ne.s32.totalorder %s271_s15, %s3528_s10  ;;  %p3537_p10 = scmp.lt.s32.totalorder %s3528_s10, %s3528_s10 }
  0x61   : > { %p3531_p7 = pnand %p3529_p4, %p3853_p8  ;;  %p3538_p1 = por %p3537_p10, %p3536_p5 }
  0x63   : > { %p3532_p9 = pneg %p3531_p7 }
  0x65   : > { %p3539_p3 = pnand %p3538_p1, %p3532_p9 }
  0x67   : > { %3542 = shalt.err (!%p3539_p3)
}
  0x68   : > { %3268 = dma.hbm_to_vmem [thread:$0]  (!%p3837_p6), %s4390_s4, 512, %s271_s15, [#allocation9], %s4377_s12, %s4377_s12, %s4378_s14  }
  0x69   : > { %s3736_s16 = smov [#allocation11]   ;;  %s3543_s20 = scalar_lea.hbm %s4371_s5, 512 }
  0x6a   : > { %s283_s17 = sshll.u32 %s3736_s16, 4  ;;  %p3544_p1 = scmp.ne.s32.totalorder %s4371_s5, %s3543_s20  ;;  %s284_s17 = int_to_ptr.vmem [resolvable:$true] %s283_s17 }
  0x6b   : > { %p3550_p12 = scmp.lt.u32.totalorder %s3543_s20, %s4371_s5 }
  0x6c   : > { %p3546_p3 = pnand %p3544_p1, %p3853_p8 }
  0x6e   : > { %p3547_p11 = pneg %p3546_p3 }
  0x70   : > { %p3552_p13 = pnand %p3550_p12, %p3547_p11 }
  0x72   : > { %3555 = shalt.err (!%p3552_p13)
}
  0x73   : > { %s3556_s15 = scalar_lea.vmem %s284_s17, 512  ;;  %p3564_p7 = scmp.lt.s32.totalorder %s284_s17, %s284_s17 }
  0x74   : > { %p3557_p0 = scmp.ne.s32.totalorder %s284_s17, %s3556_s15  ;;  %p3565_p9 = scmp.lt.s32.totalorder %s3556_s15, %s3556_s15 }
  0x76   : > { %p3559_p2 = pnand %p3557_p0, %p3853_p8  ;;  %p3566_p5 = por %p3565_p9, %p3564_p7 }
  0x78   : > { %p3560_p4 = pneg %p3559_p2 }
  0x7a   : > { %p3567_p10 = pnand %p3566_p5, %p3560_p4 }
  0x7c   : > { %3570 = shalt.err (!%p3567_p10)
}
  0x7d   : > { %3271 = dma.hbm_to_vmem [thread:$0]  (!%p3837_p6), %s4371_s5, 512, %s284_s17, [#allocation12], %s4377_s12, %s4377_s12, %s4378_s14  }
  0x7e   : > { %s2814_s11 = sadd.s32 4294967294, %s3729_s29   ;;  %s40_s21 = sadd.s32 1, %s3725_s28 }
  0x7f   : > { %p42_p8 = scmp.ge.s32.totalorder %s40_s21, 2  ;;  %s49_s16 = sadd.s32 1, %s3717_s26 }
  0x80   : > { %p56_p1 = scmp.ne.s32.totalorder %s3717_s26, %s3713_s25  ;;  %p57_p3 = scmp.eq.s32.totalorder %s3729_s29, 0 }
  0x81   : > { %s4420_s21 = smov (%p42_p8, %s40_s21), 0  ;;  %p62_p12 = scmp.ne.s32.totalorder %s3713_s25, %s3709_s24 }
  0x82   : > { %p3954_p11 = por %p57_p3, %p56_p1  ;;  %s44_s17 = ssub.s32 %s3725_s28, %s4420_s21 }
  0x83   : > { %p219_p6 = scmp.eq.s32.totalorder %s3821_s30, 1  ;;  %p47_p13 = scmp.eq.s32.totalorder %s44_s17, 0 }
  0x84   : > { %p4392_p0 = scmp.eq.s32.totalorder %s3821_s30, 0  ;;  %p225_p7 = scmp.eq.s32.totalorder %s2814_s11, 1 }
  0x85   : > { %p3969_p4 = por %p219_p6, %p56_p1  ;;  %p3287_p5 = scmp.lt.s32.totalorder %s3729_s29, 2 }
  0x86   : > { %p3965_p2 = por %p4392_p0, %p62_p12  ;;  %p3976_p9 = por %p225_p7, %p62_p12 }
  0x87   : > { %s4394_s20 = scalar_select %p3969_p4, 1, 0 }
  0x88   : > { %s3974_s22 = scalar_select %p47_p13, %s3717_s26, %s49_s16  }
  0x89   : > { %s4395_s23 = scalar_select %p3976_p9, 1, 0 }
  0x8a   : > { %s3982_s9 = sand.u32 1, %s3717_s26   ;;  %s2822_s10 = sshll.u32 %s3725_s28, 7 }
  0x8b   : > { %s2821_s15 = sshll.u32 %s3982_s9, 3  ;;  %s4396_s0 = sld [smem:[#allocation20_spill]] }
  0x8c   : > { %s304_s11 = scalar_lea.vmem [#allocation2], %s2821_s15  ;;  %p3993_p10 = pnand %p3287_p5, %p3954_p11 }
  0x8d   : > { %s312_s16 = sshll.u32 %s304_s11, 4  ;;  %s301_s2 = scalar_lea.sflag [#allocation3], %s3982_s9  ;;  %s3997_s16 = int_to_ptr.vmem [resolvable:$true] %s312_s16 }
  0x8e   : > { %p3573_p1 = pneg %p3993_p10 }
  0x91   : > { %s3989_s17 = scalar_lea.hbm %s4396_s0, %s2822_s10  ;;  %s3576_s15 = scalar_lea.hbm %s4396_s0, 256 }
  0x92   : > { %s3571_s13 = scalar_lea.hbm %s3989_s17, 128  ;;  %p3577_p11 = scmp.lt.u32.totalorder %s3989_s17, %s4396_s0 }
  0x93   : > { %p3572_p8 = scmp.ne.s32.totalorder %s3989_s17, %s3571_s13  ;;  %p3578_p6 = scmp.lt.u32.totalorder %s3576_s15, %s3571_s13 }
  0x94   : > { %p3580_p0 = scmp.lt.u32.totalorder %s3571_s13, %s3989_s17 }
  0x95   : > { %p3574_p3 = pnand %p3573_p1, %p3572_p8  ;;  %p3579_p13 = por %p3578_p6, %p3577_p11 }
  0x97   : > { %p3575_p12 = pneg %p3574_p3  ;;  %p3581_p7 = por %p3580_p0, %p3579_p13 }
  0x99   : > { %p3582_p5 = pnand %p3581_p7, %p3575_p12 }
  0x9b   : > { %3585 = shalt.err (!%p3582_p5)
}
  0x9c   : > { %s3586_s14 = scalar_lea.vmem %s3997_s16, 128  ;;  %s3737_s10 = smov [#allocation2]  }
  0x9d   : > { %p3587_p8 = scmp.ne.s32.totalorder %s3997_s16, %s3586_s14  ;;  %s3591_s18 = sshll.u32 %s3737_s10, 4  ;;  %s3592_s18 = int_to_ptr.vmem [resolvable:$false] %s3591_s18 }
  0x9e   : > { %s3593_s7 = scalar_lea.vmem %s3592_s18, 256  ;;  %p3594_p4 = scmp.lt.s32.totalorder %s3997_s16, %s3592_s18 }
  0x9f   : > { %p3589_p3 = pnand %p3587_p8, %p3573_p1  ;;  %p3595_p11 = scmp.lt.s32.totalorder %s3593_s7, %s3586_s14 }
  0xa1   : > { %p3590_p9 = pneg %p3589_p3  ;;  %p3596_p6 = por %p3595_p11, %p3594_p4 }
  0xa3   : > { %p3597_p13 = pnand %p3596_p6, %p3590_p9 }
  0xa5   : > { %3600 = shalt.err (!%p3597_p13)
}
  0xa6   : > { %3275 = dma.hbm_to_vmem [thread:$0]  (!%p3993_p10), %s3989_s17, 128, %s3997_s16, %s301_s2  }
  0xa7   : > { %s2892_s13 = sshll.u32 %s3725_s28, 8  ;;  %s4398_s15 = sshll.u32 %s3982_s9, 4 }
  0xa8   : > { %s323_s11 = scalar_lea.vmem [#allocation5], %s4398_s15  ;;  %s319_s18 = sand.u32 1, %s3729_s29  }
  0xa9   : > { %s330_s10 = sshll.u32 %s323_s11, 4  ;;  %s4035_s0 = scalar_lea.hbm %s4367_s1, %s2892_s13  ;;  %s4029_s10 = int_to_ptr.vmem [resolvable:$true] %s330_s10 }
  0xaa   : > { %s4037_s3 = scalar_lea.sflag [#allocation6], %s319_s18  ;;  %s3601_s4 = scalar_lea.hbm %s4035_s0, 256 }
  0xab   : > { %p3602_p4 = scmp.ne.s32.totalorder %s4035_s0, %s3601_s4  ;;  %s3606_s17 = scalar_lea.hbm %s4367_s1, 512 }
  0xac   : > { %p3607_p0 = scmp.lt.u32.totalorder %s4035_s0, %s4367_s1  ;;  %p3608_p7 = scmp.lt.u32.totalorder %s3606_s17, %s3601_s4 }
  0xad   : > { %p3604_p9 = pnand %p3602_p4, %p3573_p1  ;;  %p3610_p8 = scmp.lt.u32.totalorder %s3601_s4, %s4035_s0 }
  0xae   : > { %p3609_p5 = por %p3608_p7, %p3607_p0 }
  0xaf   : > { %p3605_p12 = pneg %p3604_p9 }
  0xb0   : > { %p3611_p3 = por %p3610_p8, %p3609_p5 }
  0xb2   : > { %p3612_p11 = pnand %p3611_p3, %p3605_p12 }
  0xb4   : > { %3615 = shalt.err (!%p3612_p11)
}
  0xb5   : > { %s3616_s13 = scalar_lea.vmem %s4029_s10, 256  ;;  %s3738_s11 = smov [#allocation5]  }
  0xb6   : > { %p3617_p6 = scmp.ne.s32.totalorder %s4029_s10, %s3616_s13  ;;  %s3621_s18 = sshll.u32 %s3738_s11, 4  ;;  %s3622_s18 = int_to_ptr.vmem [resolvable:$false] %s3621_s18 }
  0xb7   : > { %s3623_s14 = scalar_lea.vmem %s3622_s18, 512  ;;  %p3624_p9 = scmp.lt.s32.totalorder %s4029_s10, %s3622_s18 }
  0xb8   : > { %p3619_p13 = pnand %p3617_p6, %p3573_p1  ;;  %p3625_p0 = scmp.lt.s32.totalorder %s3623_s14, %s3616_s13 }
  0xba   : > { %p3620_p4 = pneg %p3619_p13  ;;  %p3626_p7 = por %p3625_p0, %p3624_p9 }
  0xbc   : > { %p3627_p5 = pnand %p3626_p7, %p3620_p4 }
  0xbe   : > { %3630 = shalt.err (!%p3627_p5)
}
  0xbf   : > { %s4399_s4 = smov 8   ;;  %s4400_s7 = smov 128  }
  0xc0   : > { %3278 = dma.hbm_to_vmem [thread:$0]  (!%p3993_p10), %s4035_s0, 256, %s4029_s10, %s4037_s3, %s4400_s7, %s4400_s7, %s4399_s4  }
  0xc1   : > { %p4401_p1 = scmp.ne.s32.totalorder %s4385_s8, 0 }
  0xc2   : > { %s4069_s2 = sand.u32 (!%p4401_p1), 1, %s3713_s25  }
  0xc3   : > { %342 = sbr.rel (%p4401_p1) target bundleno = 3555 (0xde3), region = 48  ;;  %s2827_s9 = sshll.u32 (!%p4401_p1), %s4069_s2, 3 }
  0xc4   : > { %s345_s17 = scalar_lea.sflag (!%p4401_p1), [#allocation3], %s4069_s2  ;;  %s4075_s12 = scalar_lea.vmem (!%p4401_p1), [#allocation2], %s2827_s9 }
  0xca   : > { %3684 = dma.done.wait (%p3965_p2), %s345_s17, 128  }
  0xcb   : > { %3686 = vsyncadd (%p3965_p2), %s345_s17, 4294967168  ;;  %s353_s0 = sand.u32 1, %s3821_s30   ;;  %s2828_s3 = sshll.u32 %s4069_s2, 4 }
  0xcc   : > { %s354_s8 = scalar_lea.sflag [#allocation6], %s353_s0  ;;  %s4083_s10 = scalar_lea.vmem [#allocation5], %s2828_s3 }
  0xcd   : > { %3688 = dma.done.wait (%p3965_p2), %s354_s8, 256  }
  0xce   : > { %3690 = vsyncadd (%p3965_p2), %s354_s8, 4294967040  ;;  %p4402_p10 = scmp.eq.s32.totalorder %s3821_s30, 0 }
  0xd0   : > { %3692 = dma.done.wait (%p4402_p10), [#allocation6], 512   ;;  %p4403_p12 = pmov %p4402_p10 }
  0xd1   : > { %p4404_p8 = pmov %p4402_p10 }
  0xd2   : > { %3694 = vsyncadd (%p4403_p12), [#allocation6], 4294966784 }
  0xd3   : > { %3696 = dma.done.wait (%p4404_p8), [#allocation9], 1024   ;;  %p4405_p3 = pmov %p4404_p8 }
  0xd5   : > { %3698 = vsyncadd (%p4405_p3), [#allocation9], 4294966272  ;;  %p4406_p11 = pmov %p4405_p3 }
  0xd6   : > { %p4407_p6 = pmov %p4405_p3 }
  0xd7   : > { %3700 = dma.done.wait (%p4406_p11), [#allocation12], 512  }
  0xd8   : > { %3702 = vsyncadd (%p4407_p6), [#allocation12], 4294966784  ;;  %v3739_v0 = vmov 0.0|0.0   ;;  %vm3740_vm0 = vmmov 0   ;;  %v3741_v1 = vmov 0.0   ;;  %vm416_vm1 = vcmask 261120  }
  0xd9   : > { %3159 = vmatprep.subr.bf16.mxu0 %v3739_v0  ;;  %2982 = vmatprep.mubr.msk.f32.mxu0 %vm3740_vm0, %v3741_v1  ;;  %v490_v2 = vld [vmem:[#allocation8] sm:$0xff]  ;;  %v491_v3 = vld [vmem:[#allocation8 + $0x8] sm:$0xff]  ;;  %v492_v4 = vld [vmem:[#allocation8 + $0x10] sm:$0xff]  ;;  %vm654_vm2 = vcmask 31744   ;;  %s3742_s30 = smov 124   ;;  %vm734_vm4 = vcmask 130048  }
  0xda   : > { %v3165_v5 = vpack.c.bf16 %v491_v3, %v490_v2  ;;  %v493_v6 = vld [vmem:[#allocation8 + $0x18] sm:$0xff]  ;;  %v410_v7 = vld [vmem:[%s4083_s10] sm:$0xff]  ;;  %v413_v10 = vld [vmem:[#allocation7 + $0x8] sm:$0xff]  ;;  %s3743_s19 = smov 116   ;;  %s3744_s16 = smov 120   ;;  %vm998_vm5 = vcmask 1043456  }
  0xdb   : > { %v3169_v8 = vpack.c.bf16 %v493_v6, %v492_v4  ;;  %2993 = vmatprep.mubr.msk.f32.mxu1 %vm416_vm1, %v410_v7  ;;  %v412_v9 = vld [vmem:[#allocation7] sm:$0xff]  ;;  %v414_v11 = vld [vmem:[#allocation7 + $0x10] sm:$0xff]  ;;  %v415_v13 = vld [vmem:[#allocation7 + $0x18] sm:$0xff]  ;;  %s3745_s15 = smov 112   ;;  %s3746_s13 = smov 108  }
  0xdc   : > { %3166 = vmatprep.subr.bf16.mxu1 %v3165_v5  ;;  %v3160_v12 = vpack.c.bf16 %v413_v10, %v412_v9  ;;  %v3163_v14 = vpack.c.bf16 %v415_v13, %v414_v11  ;;  %v411_v15 = vld [vmem:[%s4083_s10 + $0x8] sm:$0xff]  ;;  %vm4117_vm3 = vmpackc.low %vm654_vm2, %vm654_vm2  ;;  %v575_v24 = vld [vmem:[#allocation10] sm:$0xff]  ;;  %s3747_s11 = smov 104   ;;  %s3748_s18 = smov 100  }
  0xdd   : > { %3168 = vmatpush3.bf16.msra.mxu1 %v3165_v5  ;;  %v409_v16 = vld [vmem:[%s4075_s12] sm:$0xff]  ;;  %v576_v25 = vld [vmem:[#allocation10 + $0x8] sm:$0xff]  ;;  %v819_v58 = vld [vmem:[#allocation11] sm:$0xf]  ;;  %s2889_s7 = sshll.u32 %s3721_s27, 7  ;;  %s408_s17 = scalar_lea.vmem [#allocation13], %s2827_s9 }
  0xde   : > { %3170 = vmatprep.subr.bf16.mxu1 %v3169_v8  ;;  %3161 = vmatpush3.bf16.msra.mxu0 %v3160_v12  ;;  %v577_v26 = vld [vmem:[#allocation10 + $0x10] sm:$0xff]  ;;  %v3173_v27 = vpack.c.bf16 %v576_v25, %v575_v24  ;;  %v578_v28 = vld [vmem:[#allocation10 + $0x18] sm:$0xff]  ;;  %v994_v4 = vld [vmem:[#allocation11 + $0x4] sm:$0xf]  ;;  %s2672_s12 = sshll.u32 %s408_s17, 4  ;;  %s4410_s8 = sld [smem:[#allocation24_spill]]  ;;  %s4318_s12 = int_to_ptr.vmem [resolvable:$true] %s2672_s12 }
  0xdf   : > { %3162 = vmatprep.subr.bf16.mxu0 %v3739_v0  ;;  %v3177_v29 = vpack.c.bf16 %v578_v28, %v577_v26  ;;  %s3631_s27 = scalar_lea.vmem %s4318_s12, 128  ;;  %p4411_p13 = scmp.ne.s32.totalorder %s4394_s20, 0 }
  0xe0   : > { %p3632_p2 = scmp.ne.s32.totalorder %s4318_s12, %s3631_s27  ;;  %s3749_s9 = smov [#allocation13]  }
  0xe1   : > { %3172 = vmatpush3.bf16.msra.mxu1 %v3169_v8 }
  0xe2   : > { %3164 = vmatpush3.bf16.msra.mxu0 %v3163_v14  ;;  %3181 = vmatprep.subr.bf16.mxu1 %v3739_v0  ;;  %p3633_p4 = pnand %p3632_p2, %p4411_p13 }
  0xe3   : > { %3174 = vmatprep.subr.bf16.mxu0 %v3173_v27 }
  0xe4   : > { %2994 = vmatmul.mubr.msk.f32.vlgmr.msra.gmra.mrb[0].mxu1 %vm416_vm1, %v411_v15  ;;  %s4316_s10 = scalar_lea.hbm %s4410_s8, %s2889_s7  ;;  %p3634_p9 = pneg %p3633_p4 }
  0xe5   : > { %2983 = vmatmul.mubr.msk.f32.vlgmr.msra.gmra.mrb[0].mxu0 %vm416_vm1, %v409_v16  ;;  %3011 = vmatprep.mubr.msk.f32.mxu1 %vm3740_vm0, %v3741_v1 }
  0xe6   : > { %3004 = vmatprep.mubr.msk.f32.mxu0 %vm416_vm1, %v410_v7  ;;  %3176 = vmatpush3.bf16.msra.mxu0 %v3173_v27 }
  0xe7   : > { %3178 = vmatprep.subr.bf16.mxu0 %v3177_v29 }
  0xea   : > { %3180 = vmatpush3.bf16.msra.mxu0 %v3177_v29 }
  0xeb   : > { %3185 = vmatprep.subr.bf16.mxu0 %v3739_v0 }
  0xed   : > { %3005 = vmatmul.mubr.msk.f32.vlgmr.msra.gmra.mrb[2].mxu0 %vm416_vm1, %v411_v15 }
  0xee   : > { %3018 = vmatprep.mubr.msk.f32.mxu0 %vm3740_vm0, %v3741_v1 }
 0x1b7   : > { %v2995_v17 = vpop.f32.mrb[0].mxu1 }
 0x1b8   : > { %v566_v18 = vpop.f32.mrb[1].mxu1  ;;  %v4121_v20 = vpop.f32.mrb[0].mxu0 }
 0x1b9   : > { %v4123_v21 = vpack.i.bf16 %v2995_v17, %v566_v18  ;;  %v3182_v22 = vpack.c.bf16 %v2995_v17, %v566_v18  ;;  %v2984_v23 = vpop.f32.mrb[1].mxu0 }
 0x1bb   : > { %3358 = vrot.lane.b32.xlu0 %v4123_v21, %s3742_s30  ;;  %3184 = vmatpush3.bf16.xpose.msk.msra.mxu1 %vm4117_vm3, %v3182_v22 }
 0x1bc   : > { %3188 = vmatprep.subr.bf16.mxu1 %v3739_v0 }
 0x1bf   : > { %820 = vrot.lane.b32.xlu0 %v4121_v20, %s3742_s30 }
 0x1c0   : > { %v3006_v44 = vpop.f32.mrb[2].mxu0 }
 0x1c1   : > { %v645_v45 = vpop.f32.mrb[3].mxu0 }
 0x1c2   : > { %3012 = vmatmul.mubr.msk.f32.vlgmr.msra.gmra.mrb[2].mxu1 %vm654_vm2, %v4121_v20  ;;  %v4148_v46 = vpack.i.bf16 %v3006_v44, %v645_v45  ;;  %v3186_v49 = vpack.c.bf16 %v3006_v44, %v645_v45 }
 0x1c3   : > { %3025 = vmatprep.mubr.msk.f32.mxu1 %vm3740_vm0, %v3741_v1 }
 0x1c4   : > { %3187 = vmatpush3.bf16.msra.mxu0 %v3186_v49 }
 0x1c5   : > { %3192 = vmatprep.subr.bf16.mxu0 %v3739_v0 }
 0x22d   : > { %v3359_v30 = vpop.permute.xlu0 %3358 }
 0x22e   : > { %v3361_v31 = vunpack.i.h.bf16 %v3359_v30  ;;  %v3360_v32 = vunpack.i.l.bf16 %v3359_v30 }
 0x230   : > { %v3189_v33 = vpack.c.bf16 %v3361_v31, %v3360_v32 }
 0x231   : > { %v821_v34 = vpop.permute.xlu0 %820 }
 0x232   : > { %3191 = vmatpush3.bf16.xpose.msk.msra.mxu1 %vm4117_vm3, %v3189_v33 }
 0x233   : > { %3040 = vmatprep.subr.mxu1 %v3741_v1 }
 0x239   : > { %3026 = vmatmul.mubr.msk.f32.vlgmr.msra.gmra.mrb[4].mxu1 %vm654_vm2, %v821_v34 }
 0x23a   : > { %3042 = vmatprep.mubr.msk.f32.mxu1 %vm3740_vm0, %v3741_v1  ;;  %3041 = vmatpush3.msk.msra.mxu1 %vm998_vm5, %v819_v58 }
 0x23b   : > { %3199 = vmatprep.subr.bf16.mxu1 %v3739_v0 }
 0x295   : > { %v730_v35 = vpop.f32.mrb[2].mxu1 }
 0x296   : > { %v735_v36 = vsel %vm734_vm4, %v730_v35, -inf  ;;  %v3013_v37 = vpop.f32.mrb[3].mxu1 }
 0x297   : > { %736 = vmax.xlane.f32.xlu1 %v735_v36 }
 0x30c   : > { %v898_v38 = vpop.f32.mrb[4].mxu1 }
 0x30d   : > { %v3027_v39 = vpop.f32.mrb[5].mxu1  ;;  %v902_v40 = vsel %vm734_vm4, %v898_v38, -inf }
 0x30e   : > { %903 = vmax.xlane.f32.xlu1 %v902_v40 }
 0x324   : > { %v737_v41 = vpop.xlane.xlu1 %736 }
 0x325   : > { %v738_v42 = vsub.f32 %v730_v35, %v737_v41 }
 0x327   : > { %v739_v43 = vmul.f32 1.442695, %v738_v42 }
 0x329   : > { %3427 = vpow2.f32 %v739_v43 }
 0x333   : > { %v3428_v47 = vpop.eup %3427 }
 0x334   : > { %v741_v48 = vsel %vm734_vm4, %v3428_v47, 0.0 }
 0x335   : > { %742 = vadd.xlane.f32.xlu0 %v741_v48 }
 0x34b   : > { %1398 = vrot.lane.b32.xlu0 %v4121_v20, %s3743_s19 }
 0x39b   : > { %v904_v50 = vpop.xlane.xlu1 %903 }
 0x39c   : > { %v905_v51 = vsub.f32 %v898_v38, %v904_v50 }
 0x39e   : > { %v906_v52 = vmul.f32 1.442695, %v905_v51 }
 0x3a0   : > { %3429 = vpow2.f32 %v906_v52 }
 0x3aa   : > { %v3430_v53 = vpop.eup %3429 }
 0x3ab   : > { %v908_v54 = vsel %vm734_vm4, %v3430_v53, 0.0 }
 0x3ac   : > { %909 = vadd.xlane.f32.xlu1 %v908_v54 }
 0x3bd   : > { %3363 = vrot.lane.b32.xlu1 %v4148_v46, %s3742_s30  ;;  %s2658_s30 = scalar_lea.sflag [#allocation4], %s4069_s2 }
 0x3c1   : > { %3368 = vrot.lane.b32.xlu1 %v4123_v21, %s3744_s16 }
 0x3c2   : > { %v743_v55 = vpop.xlane.xlu0 %742 }
 0x3c3   : > { %3431 = vrcp.f32 %v743_v55 }
 0x3c5   : > { %1148 = vrot.lane.b32.xlu1 %v4121_v20, %s3744_s16 }
 0x3c6   : > { %v1399_v18 = vpop.permute.xlu0 %1398 }
 0x3c9   : > { %3373 = vrot.lane.b32.xlu1 %v4123_v21, %s3743_s19 }
 0x3cd   : > { %v3432_v56 = vpop.eup %3431 }
 0x3ce   : > { %v745_v57 = vmul.f32 %v3432_v56, %v3428_v47  ;;  %v1320_v56 = vld [vmem:[#allocation11 + $0x8] sm:$0xf] }
 0x3d0   : > { %3019 = vmatmul.mubr.msk.f32.vlgmr.msra.gmra.mrb[4].mxu0 %vm734_vm4, %v745_v57 }
 0x3d1   : > { %3032 = vmatprep.mubr.msk.f32.mxu0 %vm3740_vm0, %v3741_v1 }
 0x439   : > { %v910_v59 = vpop.xlane.xlu1 %909 }
 0x43a   : > { %3433 = vrcp.f32 %v910_v59 }
 0x43d   : > { %v3364_v60 = vpop.permute.xlu1 %3363 }
 0x43e   : > { %v3366_v61 = vunpack.i.h.bf16 %v3364_v60  ;;  %v3365_v62 = vunpack.i.l.bf16 %v3364_v60 }
 0x440   : > { %v3193_v63 = vpack.c.bf16 %v3366_v61, %v3365_v62 }
 0x441   : > { %v3369_v7 = vpop.permute.xlu1 %3368 }
 0x442   : > { %3194 = vmatpush3.bf16.msra.mxu0 %v3193_v63  ;;  %v3371_v9 = vunpack.i.h.bf16 %v3369_v7  ;;  %v3370_v10 = vunpack.i.l.bf16 %v3369_v7 }
 0x443   : > { %3035 = vmatprep.subr.mxu0 %v3741_v1 }
 0x444   : > { %v3434_v2 = vpop.eup %3433  ;;  %v3196_v11 = vpack.c.bf16 %v3371_v9, %v3370_v10 }
 0x445   : > { %v912_v3 = vmul.f32 %v3434_v2, %v3430_v53  ;;  %v1149_v8 = vpop.permute.xlu1 %1148 }
 0x447   : > { %3033 = vmatmul.mubr.msk.f32.vlgmr.msra.gmra.mrb[6].mxu0 %vm734_vm4, %v912_v3 }
 0x448   : > { %3036 = vmatpush3.msk.msra.mxu0 %vm998_vm5, %v994_v4  ;;  %3037 = vmatprep.mubr.msk.f32.mxu0 %vm3740_vm0, %v3741_v1 }
 0x449   : > { %3195 = vmatprep.subr.bf16.mxu0 %v3739_v0  ;;  %v3374_v13 = vpop.permute.xlu1 %3373 }
 0x44a   : > { %v3376_v15 = vunpack.i.h.bf16 %v3374_v13  ;;  %v3375_v16 = vunpack.i.l.bf16 %v3374_v13 }
 0x44c   : > { %v3203_v17 = vpack.c.bf16 %v3376_v15, %v3375_v16  ;;  %v1570_v15 = vld [vmem:[#allocation11 + $0xc] sm:$0xf] }
 0x4a3   : > { %v815_v5 = vpop.f32.mrb[4].mxu0 }
 0x4a4   : > { %v3020_v6 = vpop.f32.mrb[5].mxu0  ;;  %3043 = vmatmul.mubr.msk.f32.vlgmr.msra.gmra.mrb[6].mxu1 %vm654_vm2, %v815_v5 }
 0x4a5   : > { %3056 = vmatprep.mubr.msk.f32.mxu1 %vm3740_vm0, %v3741_v1 }
 0x51a   : > { %v990_v12 = vpop.f32.mrb[6].mxu0 }
 0x51b   : > { %v3034_v14 = vpop.f32.mrb[7].mxu0  ;;  %3038 = vmatmul.mubr.msk.f32.vlgmr.msra.gmra.mrb[8].mxu0 %vm654_vm2, %v990_v12 }
 0x51c   : > { %3198 = vmatpush3.bf16.xpose.msk.msra.mxu0 %vm4117_vm3, %v3196_v11  ;;  %3049 = vmatprep.mubr.msk.f32.mxu0 %vm3740_vm0, %v3741_v1 }
 0x51d   : > { %3202 = vmatprep.subr.bf16.mxu0 %v3739_v0 }
 0x523   : > { %3050 = vmatmul.mubr.msk.f32.vlgmr.msra.gmra.mrb[10].mxu0 %vm654_vm2, %v1149_v8 }
 0x524   : > { %3205 = vmatpush3.bf16.xpose.msk.msra.mxu0 %vm4117_vm3, %v3203_v17  ;;  %3068 = vmatprep.mubr.msk.f32.mxu0 %vm3740_vm0, %v3741_v1 }
 0x525   : > { %3209 = vmatprep.subr.bf16.mxu0 %v3739_v0 }
 0x52b   : > { %3069 = vmatmul.mubr.msk.f32.vlgmr.msra.gmra.mrb[12].mxu0 %vm654_vm2, %v1399_v18 }
 0x52c   : > { %3087 = vmatprep.mubr.msk.f32.mxu0 %vm3740_vm0, %v3741_v1 }
 0x577   : > { %v1144_v22 = vpop.f32.mrb[6].mxu1 }
 0x578   : > { %v3044_v23 = vpop.f32.mrb[7].mxu1 }
 0x5ee   : > { %v1068_v24 = vpop.f32.mrb[8].mxu0 }
 0x5ef   : > { %v4192_v25 = vadd.f32 %v1144_v22, %v1068_v24  ;;  %v3039_v26 = vpop.f32.mrb[9].mxu0 }
 0x5f6   : > { %v1226_v27 = vpop.f32.mrb[10].mxu0 }
 0x5f7   : > { %v3051_v28 = vpop.f32.mrb[11].mxu0  ;;  %v1230_v29 = vsel %vm734_vm4, %v1226_v27, -inf }
 0x5f8   : > { %1231 = vmax.xlane.f32.xlu1 %v1230_v29 }
 0x5fe   : > { %v1476_v30 = vpop.f32.mrb[12].mxu0 }
 0x5ff   : > { %v3070_v31 = vpop.f32.mrb[13].mxu0  ;;  %v1480_v32 = vsel %vm734_vm4, %v1476_v30, -inf }
 0x609   : > { %3378 = vrot.lane.b32.xlu1 %v4148_v46, %s3744_s16 }
 0x60d   : > { %1648 = vrot.lane.b32.xlu1 %v4121_v20, %s3745_s15 }
 0x631   : > { %1481 = vmax.xlane.f32.xlu1 %v1480_v32 }
 0x642   : > { %3388 = vrot.lane.b32.xlu1 %v4148_v46, %s3743_s19  ;;  %s3635_s19 = sshll.u32 %s3749_s9, 4  ;;  %s3636_s19 = int_to_ptr.vmem [resolvable:$false] %s3635_s19 }
 0x643   : > { %s3637_s16 = scalar_lea.vmem %s3636_s19, 256  ;;  %p3638_p0 = scmp.lt.s32.totalorder %s4318_s12, %s3636_s19 }
 0x644   : > { %p3639_p7 = scmp.lt.s32.totalorder %s3637_s16, %s3631_s27 }
 0x646   : > { %1898 = vrot.lane.b32.xlu1 %v4121_v20, %s3746_s13  ;;  %p3640_p5 = por %p3639_p7, %p3638_p0 }
 0x648   : > { %p3641_p1 = pnand %p3640_p5, %p3634_p9 }
 0x685   : > { %v1232_v33 = vpop.xlane.xlu1 %1231 }
 0x686   : > { %v1233_v34 = vsub.f32 %v1226_v27, %v1232_v33 }
 0x688   : > { %v1234_v35 = vmul.f32 1.442695, %v1233_v34 }
 0x689   : > { %v3379_v36 = vpop.permute.xlu1 %3378 }
 0x68a   : > { %3435 = vpow2.f32 %v1234_v35  ;;  %v3381_v37 = vunpack.i.h.bf16 %v3379_v36  ;;  %v3380_v38 = vunpack.i.l.bf16 %v3379_v36 }
 0x68c   : > { %v3200_v39 = vpack.c.bf16 %v3381_v37, %v3380_v38 }
 0x68d   : > { %v1649_v42 = vpop.permute.xlu1 %1648 }
 0x68e   : > { %3201 = vmatpush3.bf16.msra.mxu1 %v3200_v39 }
 0x68f   : > { %3059 = vmatprep.subr.mxu1 %v3741_v1 }
 0x694   : > { %v3436_v40 = vpop.eup %3435 }
 0x695   : > { %v1236_v41 = vsel %vm734_vm4, %v3436_v40, 0.0 }
 0x696   : > { %1237 = vadd.xlane.f32.xlu0 %v1236_v41 }
 0x6ac   : > { %3383 = vrot.lane.b32.xlu0 %v4123_v21, %s3745_s15 }
 0x6be   : > { %v1482_v43 = vpop.xlane.xlu1 %1481 }
 0x6bf   : > { %v1483_v44 = vsub.f32 %v1476_v30, %v1482_v43 }
 0x6c1   : > { %v1484_v45 = vmul.f32 1.442695, %v1483_v44 }
 0x6c2   : > { %v3389_v62 = vpop.permute.xlu1 %3388 }
 0x6c3   : > { %3437 = vpow2.f32 %v1484_v45  ;;  %v3391_v2 = vunpack.i.h.bf16 %v3389_v62  ;;  %v3390_v3 = vunpack.i.l.bf16 %v3389_v62  ;;  %v1820_v45 = vld [vmem:[#allocation11 + $0x10] sm:$0xf] }
 0x6c5   : > { %v3207_v5 = vpack.c.bf16 %v3391_v2, %v3390_v3 }
 0x6c6   : > { %v1899_v63 = vpop.permute.xlu1 %1898 }
 0x6cd   : > { %v3438_v47 = vpop.eup %3437 }
 0x6ce   : > { %v1486_v48 = vsel %vm734_vm4, %v3438_v47, 0.0 }
 0x6cf   : > { %1487 = vadd.xlane.f32.xlu0 %v1486_v48 }
 0x6e5   : > { %3393 = vrot.lane.b32.xlu0 %v4123_v21, %s3746_s13 }
 0x723   : > { %v1238_v49 = vpop.xlane.xlu0 %1237 }
 0x724   : > { %3439 = vrcp.f32 %v1238_v49 }
 0x727   : > { %v3384_v50 = vpop.permute.xlu0 %3383 }
 0x728   : > { %v3386_v51 = vunpack.i.h.bf16 %v3384_v50  ;;  %v3385_v52 = vunpack.i.l.bf16 %v3384_v50 }
 0x72a   : > { %v3210_v53 = vpack.c.bf16 %v3386_v51, %v3385_v52 }
 0x72c   : > { %3212 = vmatpush3.bf16.xpose.msk.msra.mxu0 %vm4117_vm3, %v3210_v53 }
 0x72d   : > { %3216 = vmatprep.subr.bf16.mxu0 %v3739_v0 }
 0x72e   : > { %v3440_v54 = vpop.eup %3439 }
 0x72f   : > { %v1240_v55 = vmul.f32 %v3440_v54, %v3436_v40 }
 0x731   : > { %3057 = vmatmul.mubr.msk.f32.vlgmr.msra.gmra.mrb[8].mxu1 %vm734_vm4, %v1240_v55 }
 0x732   : > { %3060 = vmatpush3.msk.msra.mxu1 %vm998_vm5, %v1320_v56  ;;  %3061 = vmatprep.mubr.msk.f32.mxu1 %vm3740_vm0, %v3741_v1 }
 0x733   : > { %3088 = vmatmul.mubr.msk.f32.vlgmr.msra.gmra.mrb[14].mxu0 %vm654_vm2, %v1649_v42  ;;  %3206 = vmatprep.subr.bf16.mxu1 %v3739_v0 }
 0x734   : > { %3106 = vmatprep.mubr.msk.f32.mxu0 %vm3740_vm0, %v3741_v1 }
 0x75c   : > { %v1488_v57 = vpop.xlane.xlu0 %1487 }
 0x75d   : > { %3441 = vrcp.f32 %v1488_v57 }
 0x760   : > { %v3394_v58 = vpop.permute.xlu0 %3393 }
 0x761   : > { %v3396_v59 = vunpack.i.h.bf16 %v3394_v58  ;;  %v3395_v60 = vunpack.i.l.bf16 %v3394_v58 }
 0x763   : > { %v3217_v61 = vpack.c.bf16 %v3396_v59, %v3395_v60 }
 0x765   : > { %3219 = vmatpush3.bf16.xpose.msk.msra.mxu0 %vm4117_vm3, %v3217_v61 }
 0x766   : > { %3223 = vmatprep.subr.bf16.mxu0 %v3739_v0 }
 0x767   : > { %v3442_v4 = vpop.eup %3441 }
 0x768   : > { %v1490_v9 = vmul.f32 %v3442_v4, %v3438_v47 }
 0x76c   : > { %3107 = vmatmul.mubr.msk.f32.vlgmr.msra.gmra.mrb[16].mxu0 %vm654_vm2, %v1899_v63 }
 0x76d   : > { %3125 = vmatprep.mubr.msk.f32.mxu0 %vm3740_vm0, %v3741_v1 }
 0x804   : > { %v1316_v6 = vpop.f32.mrb[8].mxu1 }
 0x805   : > { %v3058_v7 = vpop.f32.mrb[9].mxu1  ;;  %3062 = vmatmul.mubr.msk.f32.vlgmr.msra.gmra.mrb[10].mxu1 %vm654_vm2, %v1316_v6  ;;  %v2070_v6 = vld [vmem:[#allocation11 + $0x14] sm:$0xf] }
 0x806   : > { %3208 = vmatpush3.bf16.msra.mxu1 %v3207_v5  ;;  %v1726_v8 = vpop.f32.mrb[14].mxu0  ;;  %3075 = vmatprep.mubr.msk.f32.mxu1 %vm3740_vm0, %v3741_v1 }
 0x807   : > { %v3089_v10 = vpop.f32.mrb[15].mxu0  ;;  %v1730_v11 = vsel %vm734_vm4, %v1726_v8, -inf  ;;  %3078 = vmatprep.subr.mxu1 %v3741_v1 }
 0x808   : > { %1731 = vmax.xlane.f32.xlu1 %v1730_v11 }
 0x809   : > { %3076 = vmatmul.mubr.msk.f32.vlgmr.msra.gmra.mrb[12].mxu1 %vm734_vm4, %v1490_v9 }
 0x80a   : > { %3080 = vmatprep.mubr.msk.f32.mxu1 %vm3740_vm0, %v3741_v1  ;;  %3079 = vmatpush3.msk.msra.mxu1 %vm998_vm5, %v1570_v15 }
 0x80b   : > { %3213 = vmatprep.subr.bf16.mxu1 %v3739_v0 }
 0x819   : > { %3398 = vrot.lane.b32.xlu1 %v4148_v46, %s3745_s15 }
 0x81d   : > { %2148 = vrot.lane.b32.xlu1 %v4121_v20, %s3747_s11 }
 0x83f   : > { %v1976_v12 = vpop.f32.mrb[16].mxu0 }
 0x840   : > { %v3108_v13 = vpop.f32.mrb[17].mxu0  ;;  %v1980_v14 = vsel %vm734_vm4, %v1976_v12, -inf }
 0x841   : > { %1981 = vmax.xlane.f32.xlu1 %v1980_v14 }
 0x852   : > { %3408 = vrot.lane.b32.xlu1 %v4148_v46, %s3746_s13 }
 0x856   : > { %2398 = vrot.lane.b32.xlu1 %v4121_v20, %s3748_s18 }
 0x895   : > { %v1732_v16 = vpop.xlane.xlu1 %1731 }
 0x896   : > { %v1733_v17 = vsub.f32 %v1726_v8, %v1732_v16 }
 0x898   : > { %v1734_v18 = vmul.f32 1.442695, %v1733_v17 }
 0x899   : > { %v3399_v24 = vpop.permute.xlu1 %3398 }
 0x89a   : > { %3443 = vpow2.f32 %v1734_v18  ;;  %v3401_v29 = vunpack.i.h.bf16 %v3399_v24  ;;  %v3400_v30 = vunpack.i.l.bf16 %v3399_v24 }
 0x89c   : > { %v3214_v34 = vpack.c.bf16 %v3401_v29, %v3400_v30 }
 0x89d   : > { %v2149_v26 = vpop.permute.xlu1 %2148 }
 0x8a4   : > { %v3444_v22 = vpop.eup %3443 }
 0x8a5   : > { %v1736_v23 = vsel %vm734_vm4, %v3444_v22, 0.0 }
 0x8a6   : > { %1737 = vadd.xlane.f32.xlu0 %v1736_v23 }
 0x8bc   : > { %3403 = vrot.lane.b32.xlu0 %v4123_v21, %s3747_s11 }
 0x8ce   : > { %v1982_v27 = vpop.xlane.xlu1 %1981 }
 0x8cf   : > { %v1983_v20 = vsub.f32 %v1976_v12, %v1982_v27 }
 0x8d1   : > { %v1984_v28 = vmul.f32 1.442695, %v1983_v20 }
 0x8d2   : > { %v3409_v51 = vpop.permute.xlu1 %3408 }
 0x8d3   : > { %3445 = vpow2.f32 %v1984_v28  ;;  %v3411_v56 = vunpack.i.h.bf16 %v3409_v51  ;;  %v3410_v57 = vunpack.i.l.bf16 %v3409_v51 }
 0x8d5   : > { %v3221_v59 = vpack.c.bf16 %v3411_v56, %v3410_v57 }
 0x8d6   : > { %v2399_v52 = vpop.permute.xlu1 %2398 }
 0x8d8   : > { %v1393_v31 = vpop.f32.mrb[10].mxu1 }
 0x8d9   : > { %v1397_v32 = vadd.f32 %v1393_v31, %v4192_v25  ;;  %v3063_v33 = vpop.f32.mrb[11].mxu1 }
 0x8dc   : > { %v1566_v35 = vpop.f32.mrb[12].mxu1 }
 0x8dd   : > { %v3446_v36 = vpop.eup %3445  ;;  %v3077_v37 = vpop.f32.mrb[13].mxu1  ;;  %3081 = vmatmul.mubr.msk.f32.vlgmr.msra.gmra.mrb[14].mxu1 %vm654_vm2, %v1566_v35 }
 0x8de   : > { %3215 = vmatpush3.bf16.msra.mxu1 %v3214_v34  ;;  %v1986_v38 = vsel %vm734_vm4, %v3446_v36, 0.0  ;;  %3094 = vmatprep.mubr.msk.f32.mxu1 %vm3740_vm0, %v3741_v1 }
 0x8df   : > { %1987 = vadd.xlane.f32.xlu0 %v1986_v38  ;;  %3097 = vmatprep.subr.mxu1 %v3741_v1 }
 0x8f5   : > { %3413 = vrot.lane.b32.xlu0 %v4123_v21, %s3748_s18 }
 0x933   : > { %v1738_v25 = vpop.xlane.xlu0 %1737 }
 0x934   : > { %3447 = vrcp.f32 %v1738_v25 }
 0x937   : > { %v3404_v39 = vpop.permute.xlu0 %3403 }
 0x938   : > { %v3406_v40 = vunpack.i.h.bf16 %v3404_v39  ;;  %v3405_v41 = vunpack.i.l.bf16 %v3404_v39 }
 0x93a   : > { %v3224_v42 = vpack.c.bf16 %v3406_v40, %v3405_v41 }
 0x93c   : > { %3226 = vmatpush3.bf16.xpose.msk.msra.mxu0 %vm4117_vm3, %v3224_v42  ;;  %v2570_v42 = vld [vmem:[#allocation11 + $0x1c] sm:$0xf] }
 0x93d   : > { %3230 = vmatprep.subr.bf16.mxu0 %v3739_v0 }
 0x93e   : > { %v3448_v43 = vpop.eup %3447 }
 0x93f   : > { %v1740_v44 = vmul.f32 %v3448_v43, %v3444_v22 }
 0x941   : > { %3095 = vmatmul.mubr.msk.f32.vlgmr.msra.gmra.mrb[16].mxu1 %vm734_vm4, %v1740_v44 }
 0x942   : > { %3098 = vmatpush3.msk.msra.mxu1 %vm998_vm5, %v1820_v45  ;;  %3099 = vmatprep.mubr.msk.f32.mxu1 %vm3740_vm0, %v3741_v1 }
 0x943   : > { %3126 = vmatmul.mubr.msk.f32.vlgmr.msra.gmra.mrb[18].mxu0 %vm654_vm2, %v2149_v26  ;;  %3220 = vmatprep.subr.bf16.mxu1 %v3739_v0 }
 0x944   : > { %3144 = vmatprep.mubr.msk.f32.mxu0 %vm3740_vm0, %v3741_v1 }
 0x96c   : > { %v1988_v21 = vpop.xlane.xlu0 %1987 }
 0x96d   : > { %3449 = vrcp.f32 %v1988_v21 }
 0x970   : > { %v3414_v47 = vpop.permute.xlu0 %3413 }
 0x971   : > { %v3416_v48 = vunpack.i.h.bf16 %v3414_v47  ;;  %v3415_v49 = vunpack.i.l.bf16 %v3414_v47 }
 0x973   : > { %v3231_v50 = vpack.c.bf16 %v3416_v48, %v3415_v49  ;;  %v2887_v49 = vld [vmem:[%s4372_s6] ss:$0 sm:$0xff] }
 0x975   : > { %3233 = vmatpush3.bf16.xpose.msk.msra.mxu0 %vm4117_vm3, %v3231_v50 }
 0x977   : > { %v3450_v58 = vpop.eup %3449 }
 0x978   : > { %v1990_v19 = vmul.f32 %v3450_v58, %v3446_v36 }
 0x97c   : > { %3145 = vmatmul.mubr.msk.f32.vlgmr.msra.gmra.mrb[20].mxu0 %vm654_vm2, %v2399_v52 }
 0x9b0   : > { %v1643_v53 = vpop.f32.mrb[14].mxu1 }
 0x9b1   : > { %v1647_v54 = vadd.f32 %v1643_v53, %v1397_v32  ;;  %v3082_v55 = vpop.f32.mrb[15].mxu1  ;;  %v2320_v32 = vld [vmem:[#allocation11 + $0x18] sm:$0xf] }
 0xa14   : > { %v1816_v60 = vpop.f32.mrb[16].mxu1 }
 0xa15   : > { %v3096_v61 = vpop.f32.mrb[17].mxu1  ;;  %3100 = vmatmul.mubr.msk.f32.vlgmr.msra.gmra.mrb[18].mxu1 %vm654_vm2, %v1816_v60 }
 0xa16   : > { %3222 = vmatpush3.bf16.msra.mxu1 %v3221_v59  ;;  %v2226_v62 = vpop.f32.mrb[18].mxu0  ;;  %3113 = vmatprep.mubr.msk.f32.mxu1 %vm3740_vm0, %v3741_v1 }
 0xa17   : > { %v3127_v63 = vpop.f32.mrb[19].mxu0  ;;  %v2230_v2 = vsel %vm734_vm4, %v2226_v62, -inf  ;;  %3116 = vmatprep.subr.mxu1 %v3741_v1 }
 0xa18   : > { %2231 = vmax.xlane.f32.xlu1 %v2230_v2 }
 0xa19   : > { %3114 = vmatmul.mubr.msk.f32.vlgmr.msra.gmra.mrb[20].mxu1 %vm734_vm4, %v1990_v19 }
 0xa1a   : > { %3118 = vmatprep.mubr.msk.f32.mxu1 %vm3740_vm0, %v3741_v1  ;;  %3117 = vmatpush3.msk.msra.mxu1 %vm998_vm5, %v2070_v6 }
 0xa1b   : > { %3227 = vmatprep.subr.bf16.mxu1 %v3739_v0 }
 0xa4f   : > { %v2476_v3 = vpop.f32.mrb[20].mxu0 }
 0xa50   : > { %v3146_v4 = vpop.f32.mrb[21].mxu0  ;;  %v2480_v5 = vsel %vm734_vm4, %v2476_v3, -inf }
 0xa51   : > { %2481 = vmax.xlane.f32.xlu1 %v2480_v5 }
 0xaa5   : > { %v2232_v7 = vpop.xlane.xlu1 %2231 }
 0xaa6   : > { %v2233_v8 = vsub.f32 %v2226_v62, %v2232_v7 }
 0xaa8   : > { %v2234_v9 = vmul.f32 1.442695, %v2233_v8 }
 0xaaa   : > { %3451 = vpow2.f32 %v2234_v9 }
 0xab4   : > { %v3452_v10 = vpop.eup %3451 }
 0xab5   : > { %v2236_v11 = vsel %vm734_vm4, %v3452_v10, 0.0 }
 0xab6   : > { %2237 = vadd.xlane.f32.xlu0 %v2236_v11 }
 0xacc   : > { %3418 = vrot.lane.b32.xlu0 %v4148_v46, %s3747_s11 }
 0xade   : > { %v2482_v12 = vpop.xlane.xlu1 %2481 }
 0xadf   : > { %v2483_v13 = vsub.f32 %v2476_v3, %v2482_v12 }
 0xae1   : > { %v2484_v14 = vmul.f32 1.442695, %v2483_v13 }
 0xae3   : > { %3453 = vpow2.f32 %v2484_v14 }
 0xae8   : > { %v1893_v15 = vpop.f32.mrb[18].mxu1 }
 0xae9   : > { %v1897_v16 = vadd.f32 %v1893_v15, %v1647_v54  ;;  %v3101_v17 = vpop.f32.mrb[19].mxu1 }
 0xaec   : > { %v2066_v18 = vpop.f32.mrb[20].mxu1 }
 0xaed   : > { %v3454_v22 = vpop.eup %3453  ;;  %v3115_v23 = vpop.f32.mrb[21].mxu1  ;;  %3119 = vmatmul.mubr.msk.f32.vlgmr.msra.gmra.mrb[22].mxu1 %vm654_vm2, %v2066_v18 }
 0xaee   : > { %v2486_v24 = vsel %vm734_vm4, %v3454_v22, 0.0  ;;  %3132 = vmatprep.mubr.msk.f32.mxu1 %vm3740_vm0, %v3741_v1 }
 0xaef   : > { %2487 = vadd.xlane.f32.xlu1 %v2486_v24 }
 0xb00   : > { %3423 = vrot.lane.b32.xlu1 %v4148_v46, %s3748_s18 }
 0xb43   : > { %v2238_v26 = vpop.xlane.xlu0 %2237 }
 0xb44   : > { %3455 = vrcp.f32 %v2238_v26 }
 0xb47   : > { %v3419_v27 = vpop.permute.xlu0 %3418 }
 0xb48   : > { %v3421_v20 = vunpack.i.h.bf16 %v3419_v27  ;;  %v3420_v28 = vunpack.i.l.bf16 %v3419_v27 }
 0xb4a   : > { %v3228_v29 = vpack.c.bf16 %v3421_v20, %v3420_v28 }
 0xb4c   : > { %3229 = vmatpush3.bf16.msra.mxu1 %v3228_v29 }
 0xb4d   : > { %3135 = vmatprep.subr.mxu1 %v3741_v1 }
 0xb4e   : > { %v3456_v30 = vpop.eup %3455 }
 0xb4f   : > { %v2240_v31 = vmul.f32 %v3456_v30, %v3452_v10 }
 0xb51   : > { %3133 = vmatmul.mubr.msk.f32.vlgmr.msra.gmra.mrb[24].mxu1 %vm734_vm4, %v2240_v31 }
 0xb52   : > { %3136 = vmatpush3.msk.msra.mxu1 %vm998_vm5, %v2320_v32  ;;  %3137 = vmatprep.mubr.msk.f32.mxu1 %vm3740_vm0, %v3741_v1 }
 0xb53   : > { %3234 = vmatprep.subr.bf16.mxu1 %v3739_v0 }
 0xb7c   : > { %v2488_v35 = vpop.xlane.xlu1 %2487 }
 0xb7d   : > { %3457 = vrcp.f32 %v2488_v35 }
 0xb80   : > { %v3424_v36 = vpop.permute.xlu1 %3423 }
 0xb81   : > { %v3426_v37 = vunpack.i.h.bf16 %v3424_v36  ;;  %v3425_v38 = vunpack.i.l.bf16 %v3424_v36 }
 0xb83   : > { %v3235_v39 = vpack.c.bf16 %v3426_v37, %v3425_v38 }
 0xb87   : > { %v3458_v25 = vpop.eup %3457 }
 0xb88   : > { %v2490_v0 = vmul.f32 %v3458_v25, %v3454_v22 }
 0xbc0   : > { %v2143_v46 = vpop.f32.mrb[22].mxu1 }
 0xbc1   : > { %v2147_v33 = vadd.f32 %v2143_v46, %v1897_v16  ;;  %v3120_v34 = vpop.f32.mrb[23].mxu1 }
 0xc24   : > { %v2316_v40 = vpop.f32.mrb[24].mxu1 }
 0xc25   : > { %v3134_v41 = vpop.f32.mrb[25].mxu1  ;;  %3138 = vmatmul.mubr.msk.f32.vlgmr.msra.gmra.mrb[26].mxu1 %vm654_vm2, %v2316_v40 }
 0xc26   : > { %3236 = vmatpush3.bf16.msra.mxu1 %v3235_v39  ;;  %3151 = vmatprep.mubr.msk.f32.mxu1 %vm3740_vm0, %v3741_v1 }
 0xc27   : > { %3154 = vmatprep.subr.mxu1 %v3741_v1 }
 0xc29   : > { %3152 = vmatmul.mubr.msk.f32.vlgmr.msra.gmra.mrb[28].mxu1 %vm734_vm4, %v2490_v0 }
 0xc2a   : > { %3156 = vmatprep.mubr.msk.f32.mxu1 %vm3740_vm0, %v3741_v1  ;;  %3155 = vmatpush3.msk.msra.mxu1 %vm998_vm5, %v2570_v42 }
 0xcf8   : > { %v2393_v43 = vpop.f32.mrb[26].mxu1 }
 0xcf9   : > { %v2397_v44 = vadd.f32 %v2393_v43, %v2147_v33  ;;  %v3139_v45 = vpop.f32.mrb[27].mxu1 }
 0xcfc   : > { %v2566_v21 = vpop.f32.mrb[28].mxu1 }
 0xcfd   : > { %v3153_v47 = vpop.f32.mrb[29].mxu1  ;;  %3157 = vmatmul.mubr.msk.f32.vlgmr.msra.gmra.mrb[30].mxu1 %vm654_vm2, %v2566_v21 }
 0xdd0   : > { %v2643_v48 = vpop.f32.mrb[30].mxu1 }
 0xdd1   : > { %v2647_v1 = vadd.f32 %v2643_v48, %v2397_v44  ;;  %v3158_v50 = vpop.f32.mrb[31].mxu1 }
 0xdd3   : > { %v2655_v51 = vadd.f32 %v2887_v49, %v2647_v1 }
 0xdd5   : > { %2656 = vst.msk [vmem:[%s408_s17] sm:$0xff] %vm416_vm1, %v2655_v51 }
 0xdd6   : > { %3644 = shalt.err (!%p3641_p1)
}
 0xdd7   : > { %s3645_s2 = scalar_lea.hbm %s4316_s10, 128  ;;  %s3649_s11 = scalar_lea.hbm %s4410_s8, 256 }
 0xdd8   : > { %p3646_p10 = scmp.ne.s32.totalorder %s4316_s10, %s3645_s2  ;;  %p3650_p3 = scmp.lt.u32.totalorder %s4316_s10, %s4410_s8 }
 0xdd9   : > { %p3651_p11 = scmp.lt.u32.totalorder %s3649_s11, %s3645_s2  ;;  %p3653_p2 = scmp.lt.u32.totalorder %s3645_s2, %s4316_s10 }
 0xdda   : > { %p3647_p12 = pnand %p3646_p10, %p4411_p13 }
 0xddb   : > { %p3652_p6 = por %p3651_p11, %p3650_p3 }
 0xddc   : > { %p3648_p8 = pneg %p3647_p12 }
 0xddd   : > { %p3654_p4 = por %p3653_p2, %p3652_p6 }
 0xddf   : > { %p3655_p9 = pnand %p3654_p4, %p3648_p8 }
 0xde1   : > { %3658 = shalt.err (!%p3655_p9)
}
 0xde2   : > { %3257 = dma.vmem_to_hbm [thread:$0]  (%p4411_p13), %s4318_s12, 128, %s4316_s10, %s2658_s30  }
 0xde3 PF: > { %s2684_s4 = sand.u32 1, %s3709_s24   ;;  %p4412_p0 = scmp.ne.s32.totalorder %s4395_s23, 0 }
 0xde4   : > { %p4413_p7 = scmp.ge.s32.totalorder %s3729_s29, 2  ;;  %s2685_s7 = scalar_lea.sflag [#allocation4], %s2684_s4 }
 0xde6   : > { %p3280_p5 = pnand %p4413_p7, %p4412_p0 }
 0xde8   : > { %3704 = dma.done.wait (!%p3280_p5), %s2685_s7, 128  }
 0xde9   : > { %3706 = vsyncadd (!%p3280_p5), %s2685_s7, 4294967168  ;;  %s28_s29 = sadd.s32 1, %s3729_s29   ;;  %s4414_s24 = smov %s3713_s25 }
 0xdea   : > { %p25_p1 = scmp.ge.s32.totalorder %s28_s29, 4   ;;  %s4415_s25 = smov %s3717_s26 }
 0xdeb   : > { %s4416_s26 = smov %s3974_s22  ;;  %s4417_s27 = smov %s3725_s28 }
 0xdec   : > { %s4418_s28 = smov %s4420_s21  ;;  %27 = sbr.rel (!%p25_p1) target bundleno = 16 (0x10), region = 122 }
 0xdf3   :  { %2690 = vsyncpa [#allocation3], 1 }
 0xdf4   :  { %2692 = vsyncpa [#allocation3 + $0x1], 1 }
 0xdf5   :  { %2693 = vsyncpa [#allocation6], 1 }
 0xdf6   :  { %2695 = vsyncpa [#allocation6 + $0x1], 1 }
 0xdf7   :  { %2696 = vsyncpa [#allocation9], 1 }
 0xdf8   :  { %2697 = vsyncpa [#allocation12], 1 }
 0xdf9   :  { %2698 = vsyncpa [#allocation4], 1 }
 0xdfa   :  { %2700 = vsyncpa [#allocation4 + $0x1], 1 }

</bundles_post_ra>
